<compile_context>
chip_gen: v7x
topology: tpu7x:2x2x1
jax: 0.10.0
libtpu: 0.0.40
codegen_flags: <defaults>
</compile_context>

<pallas_src>
import functools
import re

import jax
import jax.numpy as jnp
from jax import lax
from jax.experimental import pallas as pl
from jax.experimental.pallas import tpu as pltpu


def _round_up(x, m):
    return (x + m - 1) // m * m


def _cdiv(a, b):
    return (a + b - 1) // b


def _tpu_generation():
    """Best-effort TPU generation (5, 6, 7, ...) from device_kind; 0 if unknown."""
    try:
        kind = jax.devices()[0].device_kind.lower()
    except Exception:
        return 0
    m = (re.search(r"tpu\s*v?(\d+)", kind) or re.search(r"v(\d+)", kind)
         or re.search(r"(\d+)", kind))
    return int(m.group(1)) if m else 0


def _vmem_capacity_bytes(gen):
    try:
        cap = getattr(pltpu.get_tpu_info(), "vmem_capacity_bytes", None)
        if cap:
            return int(cap)
    except Exception:
        pass
    return (64 << 20) if gen >= 7 else (128 << 20)


def _choose_pack(D, RW, num_layers, depth, matmul_dtype, gen, vmem_cap):
    """Largest lane-packing factor whose block-diagonal weight stack fits VMEM.

    Targets 256 lanes on v6e/v7x (2x256^2 MXU) and 128 lanes on v5e/older.
    """
    target = 256 if gen >= 6 else 128
    candidates = []
    for lanes in (target, 128):
        if D < lanes and lanes % D == 0 and (lanes // D) not in candidates:
            candidates.append(lanes // D)
    candidates.append(1)
    mm = jnp.dtype(matmul_dtype).itemsize
    budget = max(vmem_cap - (16 << 20), vmem_cap // 2)
    for pack in candidates:
        Dp, RWp = pack * D, pack * RW
        if depth == 1:
            w_bytes = num_layers * (Dp * Dp * mm + Dp * 4)
        else:
            w_bytes = num_layers * (2 * Dp * RWp * mm + (RWp + Dp) * 4)
        # Keep the worst-case (double-buffered) weight stack <= 1/4 of VMEM so
        # there is room for x/out tiles and live activations.
        if 2 * w_bytes <= budget // 2:
            return pack
    return 1


def _block_diag_expand(w, pack):
    """(L, A, C) -> (L, pack*A, pack*C) block-diagonal (exact; off-blocks are 0)."""
    if pack == 1:
        return w
    L, A, C = w.shape
    eye = jnp.eye(pack, dtype=w.dtype)
    return jnp.einsum("pq,lab->lpaqb", eye, w).reshape(L, pack * A, pack * C)


def _tile_bias(b, pack):
    """(L, C) -> (L, 1, pack*C) f32 bias matching the packed lane layout."""
    L, C = b.shape
    return jnp.tile(b.astype(jnp.float32), (1, pack)).reshape(L, 1, pack * C)


# ---------------------------------------------------------------------------
# Kernels
# ---------------------------------------------------------------------------

def _gate_and_store(x_f32, h, out_ref):
    """score = h * x ; score[score == 0] = -1e20 (saturating for narrow dtypes)."""
    score = h * x_f32
    if jnp.issubdtype(out_ref.dtype, jnp.floating) and \
            float(jnp.finfo(out_ref.dtype).max) < 1e20:
        sentinel = jnp.float32(jnp.finfo(out_ref.dtype).min)   # e.g. f16: -65504
    else:
        sentinel = jnp.float32(-1e20)
    out_ref[...] = jnp.where(score == 0.0, sentinel, score).astype(out_ref.dtype)


def res_assort_kernel(x_ref, w1_ref, b1_ref, w2_ref, b2_ref, out_ref, *,
                      num_blocks, depth, unroll_blocks, unroll_depth):
    """depth >= 2 branch: per block, `depth` x [Linear, ReLU, Linear] + shortcut.

    x_ref  : (TB, Dp)      packed input tile (Dp = pack * input_dim)
    w1_ref : (L, Dp, RWp)  block-diagonal first-linear weights (matmul dtype)
    b1_ref : (L, 1, RWp)   f32
    w2_ref : (L, RWp, Dp)  block-diagonal second-linear weights (matmul dtype)
    b2_ref : (L, 1, Dp)    f32
    out_ref: (TB, Dp)
    """
    x = x_ref[...].astype(jnp.float32)          # original-precision gate input
    mm_dtype = w1_ref.dtype

    def block_body(b, h):
        def layer_body(d, y):
            l = b * depth + d
            t = jnp.dot(y.astype(mm_dtype), w1_ref[l],
                        preferred_element_type=jnp.float32) + b1_ref[l]
            t = jnp.maximum(t, 0.0)                                 # ReLU
            return jnp.dot(t.astype(mm_dtype), w2_ref[l],
                           preferred_element_type=jnp.float32) + b2_ref[l]

        y = lax.fori_loop(0, depth, layer_body, h, unroll=unroll_depth)
        return y + h                                                # shortcut

    h = lax.fori_loop(0, num_blocks, block_body, x, unroll=unroll_blocks)
    _gate_and_store(x, h, out_ref)


def res_assort_depth1_kernel(x_ref, w_ref, b_ref, out_ref, *,
                             num_blocks, unroll_blocks):
    """depth == 1 branch: per block, a single Linear(D, D) + shortcut."""
    x = x_ref[...].astype(jnp.float32)
    mm_dtype = w_ref.dtype

    def block_body(b, h):
        return jnp.dot(h.astype(mm_dtype), w_ref[b],
                       preferred_element_type=jnp.float32) + b_ref[b] + h

    h = lax.fori_loop(0, num_blocks, block_body, x, unroll=unroll_blocks)
    _gate_and_store(x, h, out_ref)


# ---------------------------------------------------------------------------
# Host-side wrapper
# ---------------------------------------------------------------------------

def init_res_assort_params(w1, b1, w2=None, b2=None, *, num_blocks, depth,
                           matmul_dtype=jnp.bfloat16, pack=None):
    """One-time packing of weights into the lane-dense block-diagonal layout.

    Call this at model init (NOT per forward): the expansion inflates the
    weight stack by pack^2 and must not ride on the inference critical path.
    """
    if depth == 1:
        L, D, D2 = w1.shape
        assert D2 == D and L == num_blocks and b1.shape == (L, D)
        RW = D
    else:
        L, D, RW = w1.shape
        assert L == num_blocks * depth
        assert w2 is not None and b2 is not None
        assert w2.shape == (L, RW, D) and b1.shape == (L, RW) and b2.shape == (L, D)

    gen = _tpu_generation()
    vmem_cap = _vmem_capacity_bytes(gen)
    if pack is None:
        pack = _choose_pack(D, RW, L, depth, matmul_dtype, gen, vmem_cap)

    params = dict(depth=depth, num_blocks=num_blocks, pack=pack,
                  input_dim=D, res_width=RW,
                  w1=_block_diag_expand(w1.astype(jnp.float32), pack
                                        ).astype(matmul_dtype),
                  b1=_tile_bias(b1, pack), w2=None, b2=None)
    if depth != 1:
        params["w2"] = _block_diag_expand(w2.astype(jnp.float32), pack
                                          ).astype(matmul_dtype)
        params["b2"] = _tile_bias(b2, pack)
    return params


_SINGLE_BUFFER_WEIGHTS_OK = None   # memoized probe for pl.Buffered(1) support


def res_assort_forward(x, params, *, batch_tile=4096):
    """x: (B, input_dim) -> (B, input_dim) scores (Res_Assort_Net.forward)."""
    global _SINGLE_BUFFER_WEIGHTS_OK

    depth, num_blocks = params["depth"], params["num_blocks"]
    pack, D, RW = params["pack"], params["input_dim"], params["res_width"]
    w1p, b1p, w2p, b2p = params["w1"], params["b1"], params["w2"], params["b2"]
    depth1 = (depth == 1)

    B, D_in = x.shape
    assert D_in == D
    L = w1p.shape[0]
    Dp = pack * D
    RWp = Dp if depth1 else pack * RW
    mm_size = jnp.dtype(w1p.dtype).itemsize

    gen = _tpu_generation()
    vmem_cap = _vmem_capacity_bytes(gen)
    budget = max(vmem_cap - (16 << 20), vmem_cap // 2)

    # Resident weight footprint (single copy).
    w_bytes = w1p.size * mm_size + b1p.size * 4
    if not depth1:
        w_bytes += w2p.size * mm_size + b2p.size * 4

    # --- batch tiling in packed rows; big tiles keep the MXU fed and amortize
    #     the ~0.35 us per-grid-step overhead. ---
    bp_needed = _round_up(max(_cdiv(B, pack), 1), 8)
    tb = min(_round_up(max(batch_tile // pack, 8), 8), bp_needed)
    if gen >= 7 and bp_needed >= 16:
        # v7x has 2 TensorCores: keep >= 2 grid steps so the "parallel" axis
        # can shard across both.
        tb = min(tb, _round_up(_cdiv(bp_needed, 2), 8))

    def _tiles_bytes(t):
        # x/out tiles (double-buffered) + live-activation headroom.
        return 2 * 2 * t * Dp * 4 + 8 * t * max(Dp, RWp) * 4

    while tb > 8 and 2 * w_bytes + _tiles_bytes(tb) > budget:
        tb = max(8, _round_up(tb // 2, 8))
    bp = _round_up(bp_needed, tb)
    grid = (bp // tb,)

    # --- pad only when needed (skip the extra HBM round trip of x / out). ---
    total_rows = bp * pack
    if total_rows == B:
        xp = x.reshape(bp, Dp)
    else:
        xp = jnp.zeros((total_rows, D), x.dtype).at[:B].set(x).reshape(bp, Dp)

    vmem_limit = int(min(max(2 * w_bytes + _tiles_bytes(tb) + (4 << 20), 32 << 20),
                         vmem_cap - (8 << 20)))

    flops = 2 * bp * L * Dp * Dp if depth1 else 4 * bp * L * Dp * RWp
    bytes_accessed = int(2 * bp * Dp * jnp.dtype(x.dtype).itemsize + w_bytes)

    unroll_depth = depth <= 8
    unroll_blocks = (num_blocks * depth) <= 8   # keep block loop rolled if deep
    io_spec = pl.BlockSpec((tb, Dp), lambda i: (i, 0))
    const3 = lambda i: (0, 0, 0)

    if depth1:
        kernel = functools.partial(res_assort_depth1_kernel,
                                   num_blocks=num_blocks,
                                   unroll_blocks=unroll_blocks)
        args = (xp, w1p, b1p)
        w_shapes = [(L, Dp, Dp), (L, 1, Dp)]
    else:
        kernel = functools.partial(res_assort_kernel,
                                   num_blocks=num_blocks, depth=depth,
                                   unroll_blocks=unroll_blocks,
                                   unroll_depth=unroll_depth)
        args = (xp, w1p, b1p, w2p, b2p)
        w_shapes = [(L, Dp, RWp), (L, 1, RWp), (L, RWp, Dp), (L, 1, Dp)]

    def _call(single_buffer_weights):
        # Constant index maps => weights DMA'd once; Buffered(1) halves their
        # VMEM reservation (important on v7x's 64 MiB VMEM).
        extra = {"pipeline_mode": pl.Buffered(1)} if single_buffer_weights else {}
        in_specs = [io_spec] + [pl.BlockSpec(s, const3, **extra) for s in w_shapes]
        return pl.pallas_call(
            kernel,
            out_shape=jax.ShapeDtypeStruct((bp, Dp), x.dtype),
            grid_spec=pltpu.PrefetchScalarGridSpec(
                num_scalar_prefetch=0,
                grid=grid,
                in_specs=in_specs,
                out_specs=io_spec),
            compiler_params=pltpu.CompilerParams(
                dimension_semantics=("parallel",),
                vmem_limit_bytes=vmem_limit),
            cost_estimate=pl.CostEstimate(flops=int(flops), transcendentals=0,
                                          bytes_accessed=bytes_accessed),
        )(*args)

    if _SINGLE_BUFFER_WEIGHTS_OK is None:
        try:
            outp = jax.block_until_ready(_call(True))
            _SINGLE_BUFFER_WEIGHTS_OK = True
        except Exception:
            _SINGLE_BUFFER_WEIGHTS_OK = False
            outp = _call(False)
    else:
        outp = _call(_SINGLE_BUFFER_WEIGHTS_OK)

    out = outp.reshape(total_rows, D)
    return out if total_rows == B else out[:B]


def res_assort_net(x, w1, b1, w2=None, b2=None, *, num_blocks, depth,
                   batch_tile=4096, matmul_dtype=jnp.bfloat16):
    """Convenience wrapper (packs per call; prefer init_res_assort_params)."""
    params = init_res_assort_params(w1, b1, w2, b2, num_blocks=num_blocks,
                                    depth=depth, matmul_dtype=matmul_dtype)
    return res_assort_forward(x, params, batch_tile=batch_tile)


def reference_forward(x, w1, b1, w2=None, b2=None, *, num_blocks, depth,
                      matmul_dtype=jnp.float32):
    """Plain-JAX reference of the PyTorch forward (optionally bf16 matmuls)."""
    x = x.astype(jnp.float32)
    h = x
    l = 0
    for _ in range(num_blocks):
        if depth == 1:
            y = jnp.dot(h.astype(matmul_dtype), w1[l].astype(matmul_dtype),
                        preferred_element_type=jnp.float32) + b1[l]
            l += 1
        else:
            y = h
            for _ in range(depth):
                t = jnp.dot(y.astype(matmul_dtype), w1[l].astype(matmul_dtype),
                            preferred_element_type=jnp.float32) + b1[l]
                t = jnp.maximum(t, 0.0)
                y = jnp.dot(t.astype(matmul_dtype), w2[l].astype(matmul_dtype),
                            preferred_element_type=jnp.float32) + b2[l]
                l += 1
        h = y + h
    score = h * x
    return jnp.where(score == 0.0, jnp.float32(-1e20), score)


if __name__ == "__main__":
    # ---- config 1: depth >= 2 branch, bf16 matmuls (production path) ----
    B, D, RW, DEPTH, NB = 16, 32, 32, 2, 2
    L = NB * DEPTH
    key = jax.random.PRNGKey(0)
    kx, kw1, kb1, kw2, kb2 = jax.random.split(key, 5)
    x = jax.random.normal(kx, (B, D), dtype=jnp.float32)
    x = x.at[0, :4].set(0.0)             # exercise the score==0 -> -1e20 path
    w1 = 0.1 * jax.random.normal(kw1, (L, D, RW), dtype=jnp.float32)
    b1 = 0.1 * jax.random.normal(kb1, (L, RW), dtype=jnp.float32)
    w2 = 0.1 * jax.random.normal(kw2, (L, RW, D), dtype=jnp.float32)
    b2 = 0.1 * jax.random.normal(kb2, (L, D), dtype=jnp.float32)

    params_bf16 = init_res_assort_params(w1, b1, w2, b2, num_blocks=NB,
                                         depth=DEPTH, matmul_dtype=jnp.bfloat16)
    out = jax.block_until_ready(res_assort_forward(x, params_bf16))
    ref = reference_forward(x, w1, b1, w2, b2, num_blocks=NB, depth=DEPTH,
                            matmul_dtype=jnp.bfloat16)
    assert out.shape == (B, D)
    assert jnp.allclose(out, ref, rtol=1e-2, atol=1e-2), "bf16 mismatch vs ref"

    # ---- config 2: same weights, full-f32 matmuls (logic check) ----
    params_f32 = init_res_assort_params(w1, b1, w2, b2, num_blocks=NB,
                                        depth=DEPTH, matmul_dtype=jnp.float32)
    out_f32 = jax.block_until_ready(res_assort_forward(x, params_f32))
    ref_f32 = reference_forward(x, w1, b1, w2, b2, num_blocks=NB, depth=DEPTH)
    assert jnp.allclose(out_f32, ref_f32, rtol=1e-3, atol=1e-3), "f32 mismatch"

    # ---- config 3: res_depth == 1 branch (single Linear per block) ----
    k1, k2, k3 = jax.random.split(jax.random.PRNGKey(1), 3)
    NB1 = 3
    w_s = 0.1 * jax.random.normal(k1, (NB1, D, D), dtype=jnp.float32)
    b_s = 0.1 * jax.random.normal(k2, (NB1, D), dtype=jnp.float32)
    x1 = jax.random.normal(k3, (24, D), dtype=jnp.float32)
    x1 = x1.at[1, :3].set(0.0)
    params_d1 = init_res_assort_params(w_s, b_s, num_blocks=NB1, depth=1,
                                       matmul_dtype=jnp.float32)
    out_d1 = jax.block_until_ready(res_assort_forward(x1, params_d1))
    ref_d1 = reference_forward(x1, w_s, b_s, num_blocks=NB1, depth=1)
    assert jnp.allclose(out_d1, ref_d1, rtol=1e-3, atol=1e-3), "depth=1 mismatch"

    # ---- config 4: deeper stack -> rolled block loop + dynamic weight index ----
    kk = jax.random.split(jax.random.PRNGKey(2), 5)
    NB4, D4, RW4, DEPTH4, B4 = 5, 32, 32, 2, 64
    L4 = NB4 * DEPTH4
    x4 = jax.random.normal(kk[0], (B4, D4), dtype=jnp.float32)
    w14 = 0.1 * jax.random.normal(kk[1], (L4, D4, RW4), dtype=jnp.float32)
    b14 = 0.1 * jax.random.normal(kk[2], (L4, RW4), dtype=jnp.float32)
    w24 = 0.1 * jax.random.normal(kk[3], (L4, RW4, D4), dtype=jnp.float32)
    b24 = 0.1 * jax.random.normal(kk[4], (L4, D4), dtype=jnp.float32)
    params4 = init_res_assort_params(w14, b14, w24, b24, num_blocks=NB4,
                                     depth=DEPTH4, matmul_dtype=jnp.float32)
    out4 = jax.block_until_ready(res_assort_forward(x4, params4))
    ref4 = reference_forward(x4, w14, b14, w24, b24, num_blocks=NB4, depth=DEPTH4)
    assert jnp.allclose(out4, ref4, rtol=1e-2, atol=1e-2), "deep-stack mismatch"

    print("KERNEL_OK")
</pallas_src>

<mosaic_0001>
module attributes {stable_mosaic.version = 11 : i64} {
  func.func @res_assort_kernel(%arg0: i32, %arg1: memref<8x128xf32, #tpu.memory_space<vmem>>, %arg2: memref<4x128x128xbf16, #tpu.memory_space<vmem>>, %arg3: memref<4x1x128xf32, #tpu.memory_space<vmem>>, %arg4: memref<4x128x128xbf16, #tpu.memory_space<vmem>>, %arg5: memref<4x1x128xf32, #tpu.memory_space<vmem>>, %arg6: memref<8x128xf32, #tpu.memory_space<vmem>>) attributes {dimension_semantics = [#tpu.dimension_semantics<parallel>], iteration_bounds = array<i64: 1>, scalar_prefetch = 0 : i64, scratch_operands = 0 : i64, tpu.core_type = #tpu.core_type<tc>, window_params = [{transform_indices = @transform_0, window_bounds = array<i64: 8, 128>}, {pipeline_mode = #tpu.pipeline_mode<synchronous>, transform_indices = @transform_1, window_bounds = array<i64: 4, 128, 128>}, {pipeline_mode = #tpu.pipeline_mode<synchronous>, transform_indices = @transform_2, window_bounds = array<i64: 4, 1, 128>}, {pipeline_mode = #tpu.pipeline_mode<synchronous>, transform_indices = @transform_3, window_bounds = array<i64: 4, 128, 128>}, {pipeline_mode = #tpu.pipeline_mode<synchronous>, transform_indices = @transform_4, window_bounds = array<i64: 4, 1, 128>}, {transform_indices = @transform_5, window_bounds = array<i64: 8, 128>}]} {
    %c0 = arith.constant 0 : index
    %c0_0 = arith.constant 0 : index
    %0 = vector.load %arg1[%c0, %c0_0] : memref<8x128xf32, #tpu.memory_space<vmem>>, vector<8x128xf32>
    %c0_i32 = arith.constant 0 : i32
    %c0_i32_1 = arith.constant 0 : i32
    %c2_i32 = arith.constant 2 : i32
    %1 = arith.muli %c0_i32, %c2_i32 : i32
    %2 = arith.addi %1, %c0_i32_1 : i32
    %3 = arith.truncf %0 : vector<8x128xf32> to vector<8x128xbf16>
    %4 = arith.index_cast %2 : i32 to index
    %c0_2 = arith.constant 0 : index
    %c0_3 = arith.constant 0 : index
    %5 = vector.load %arg2[%4, %c0_2, %c0_3] : memref<4x128x128xbf16, #tpu.memory_space<vmem>>, vector<1x128x128xbf16>
    %6 = vector.shape_cast %5 : vector<1x128x128xbf16> to vector<128x128xbf16>
    %cst = arith.constant dense<0.000000e+00> : vector<8x128xf32>
    %7 = tpu.matmul %3, %6, %cst {dimension_numbers = #tpu.dot_dimension_numbers<[1], [0], [0], [1], [0, 0, 1, 1], [], []>} : vector<8x128xbf16>, vector<128x128xbf16>, vector<8x128xf32> -> vector<8x128xf32>
    %8 = arith.index_cast %2 : i32 to index
    %c0_4 = arith.constant 0 : index
    %c0_5 = arith.constant 0 : index
    %9 = vector.load %arg3[%8, %c0_4, %c0_5] : memref<4x1x128xf32, #tpu.memory_space<vmem>>, vector<1x1x128xf32>
    %10 = vector.shape_cast %9 : vector<1x1x128xf32> to vector<1x128xf32>
    %11 = vector.broadcast %10 : vector<1x128xf32> to vector<8x128xf32>
    %12 = arith.addf %7, %11 : vector<8x128xf32>
    %cst_6 = arith.constant 0.000000e+00 : f32
    %13 = vector.broadcast %cst_6 : f32 to vector<8x128xf32>
    %14 = arith.maximumf %12, %13 : vector<8x128xf32>
    %15 = arith.truncf %14 : vector<8x128xf32> to vector<8x128xbf16>
    %16 = arith.index_cast %2 : i32 to index
    %c0_7 = arith.constant 0 : index
    %c0_8 = arith.constant 0 : index
    %17 = vector.load %arg4[%16, %c0_7, %c0_8] : memref<4x128x128xbf16, #tpu.memory_space<vmem>>, vector<1x128x128xbf16>
    %18 = vector.shape_cast %17 : vector<1x128x128xbf16> to vector<128x128xbf16>
    %cst_9 = arith.constant dense<0.000000e+00> : vector<8x128xf32>
    %19 = tpu.matmul %15, %18, %cst_9 {dimension_numbers = #tpu.dot_dimension_numbers<[1], [0], [0], [1], [0, 0, 1, 1], [], []>} : vector<8x128xbf16>, vector<128x128xbf16>, vector<8x128xf32> -> vector<8x128xf32>
    %20 = arith.index_cast %2 : i32 to index
    %c0_10 = arith.constant 0 : index
    %c0_11 = arith.constant 0 : index
    %21 = vector.load %arg5[%20, %c0_10, %c0_11] : memref<4x1x128xf32, #tpu.memory_space<vmem>>, vector<1x1x128xf32>
    %22 = vector.shape_cast %21 : vector<1x1x128xf32> to vector<1x128xf32>
    %23 = vector.broadcast %22 : vector<1x128xf32> to vector<8x128xf32>
    %24 = arith.addf %19, %23 : vector<8x128xf32>
    %c1_i32 = arith.constant 1 : i32
    %c2_i32_12 = arith.constant 2 : i32
    %25 = arith.muli %c0_i32, %c2_i32_12 : i32
    %26 = arith.addi %25, %c1_i32 : i32
    %27 = arith.truncf %24 : vector<8x128xf32> to vector<8x128xbf16>
    %28 = arith.index_cast %26 : i32 to index
    %c0_13 = arith.constant 0 : index
    %c0_14 = arith.constant 0 : index
    %29 = vector.load %arg2[%28, %c0_13, %c0_14] : memref<4x128x128xbf16, #tpu.memory_space<vmem>>, vector<1x128x128xbf16>
    %30 = vector.shape_cast %29 : vector<1x128x128xbf16> to vector<128x128xbf16>
    %cst_15 = arith.constant dense<0.000000e+00> : vector<8x128xf32>
    %31 = tpu.matmul %27, %30, %cst_15 {dimension_numbers = #tpu.dot_dimension_numbers<[1], [0], [0], [1], [0, 0, 1, 1], [], []>} : vector<8x128xbf16>, vector<128x128xbf16>, vector<8x128xf32> -> vector<8x128xf32>
    %32 = arith.index_cast %26 : i32 to index
    %c0_16 = arith.constant 0 : index
    %c0_17 = arith.constant 0 : index
    %33 = vector.load %arg3[%32, %c0_16, %c0_17] : memref<4x1x128xf32, #tpu.memory_space<vmem>>, vector<1x1x128xf32>
    %34 = vector.shape_cast %33 : vector<1x1x128xf32> to vector<1x128xf32>
    %35 = vector.broadcast %34 : vector<1x128xf32> to vector<8x128xf32>
    %36 = arith.addf %31, %35 : vector<8x128xf32>
    %cst_18 = arith.constant 0.000000e+00 : f32
    %37 = vector.broadcast %cst_18 : f32 to vector<8x128xf32>
    %38 = arith.maximumf %36, %37 : vector<8x128xf32>
    %39 = arith.truncf %38 : vector<8x128xf32> to vector<8x128xbf16>
    %40 = arith.index_cast %26 : i32 to index
    %c0_19 = arith.constant 0 : index
    %c0_20 = arith.constant 0 : index
    %41 = vector.load %arg4[%40, %c0_19, %c0_20] : memref<4x128x128xbf16, #tpu.memory_space<vmem>>, vector<1x128x128xbf16>
    %42 = vector.shape_cast %41 : vector<1x128x128xbf16> to vector<128x128xbf16>
    %cst_21 = arith.constant dense<0.000000e+00> : vector<8x128xf32>
    %43 = tpu.matmul %39, %42, %cst_21 {dimension_numbers = #tpu.dot_dimension_numbers<[1], [0], [0], [1], [0, 0, 1, 1], [], []>} : vector<8x128xbf16>, vector<128x128xbf16>, vector<8x128xf32> -> vector<8x128xf32>
    %44 = arith.index_cast %26 : i32 to index
    %c0_22 = arith.constant 0 : index
    %c0_23 = arith.constant 0 : index
    %45 = vector.load %arg5[%44, %c0_22, %c0_23] : memref<4x1x128xf32, #tpu.memory_space<vmem>>, vector<1x1x128xf32>
    %46 = vector.shape_cast %45 : vector<1x1x128xf32> to vector<1x128xf32>
    %47 = vector.broadcast %46 : vector<1x128xf32> to vector<8x128xf32>
    %48 = arith.addf %43, %47 : vector<8x128xf32>
    %c2_i32_24 = arith.constant 2 : i32
    %49 = arith.addf %48, %0 : vector<8x128xf32>
    %c1_i32_25 = arith.constant 1 : i32
    %c0_i32_26 = arith.constant 0 : i32
    %c2_i32_27 = arith.constant 2 : i32
    %50 = arith.muli %c1_i32_25, %c2_i32_27 : i32
    %51 = arith.addi %50, %c0_i32_26 : i32
    %52 = arith.truncf %49 : vector<8x128xf32> to vector<8x128xbf16>
    %53 = arith.index_cast %51 : i32 to index
    %c0_28 = arith.constant 0 : index
    %c0_29 = arith.constant 0 : index
    %54 = vector.load %arg2[%53, %c0_28, %c0_29] : memref<4x128x128xbf16, #tpu.memory_space<vmem>>, vector<1x128x128xbf16>
    %55 = vector.shape_cast %54 : vector<1x128x128xbf16> to vector<128x128xbf16>
    %cst_30 = arith.constant dense<0.000000e+00> : vector<8x128xf32>
    %56 = tpu.matmul %52, %55, %cst_30 {dimension_numbers = #tpu.dot_dimension_numbers<[1], [0], [0], [1], [0, 0, 1, 1], [], []>} : vector<8x128xbf16>, vector<128x128xbf16>, vector<8x128xf32> -> vector<8x128xf32>
    %57 = arith.index_cast %51 : i32 to index
    %c0_31 = arith.constant 0 : index
    %c0_32 = arith.constant 0 : index
    %58 = vector.load %arg3[%57, %c0_31, %c0_32] : memref<4x1x128xf32, #tpu.memory_space<vmem>>, vector<1x1x128xf32>
    %59 = vector.shape_cast %58 : vector<1x1x128xf32> to vector<1x128xf32>
    %60 = vector.broadcast %59 : vector<1x128xf32> to vector<8x128xf32>
    %61 = arith.addf %56, %60 : vector<8x128xf32>
    %cst_33 = arith.constant 0.000000e+00 : f32
    %62 = vector.broadcast %cst_33 : f32 to vector<8x128xf32>
    %63 = arith.maximumf %61, %62 : vector<8x128xf32>
    %64 = arith.truncf %63 : vector<8x128xf32> to vector<8x128xbf16>
    %65 = arith.index_cast %51 : i32 to index
    %c0_34 = arith.constant 0 : index
    %c0_35 = arith.constant 0 : index
    %66 = vector.load %arg4[%65, %c0_34, %c0_35] : memref<4x128x128xbf16, #tpu.memory_space<vmem>>, vector<1x128x128xbf16>
    %67 = vector.shape_cast %66 : vector<1x128x128xbf16> to vector<128x128xbf16>
    %cst_36 = arith.constant dense<0.000000e+00> : vector<8x128xf32>
    %68 = tpu.matmul %64, %67, %cst_36 {dimension_numbers = #tpu.dot_dimension_numbers<[1], [0], [0], [1], [0, 0, 1, 1], [], []>} : vector<8x128xbf16>, vector<128x128xbf16>, vector<8x128xf32> -> vector<8x128xf32>
    %69 = arith.index_cast %51 : i32 to index
    %c0_37 = arith.constant 0 : index
    %c0_38 = arith.constant 0 : index
    %70 = vector.load %arg5[%69, %c0_37, %c0_38] : memref<4x1x128xf32, #tpu.memory_space<vmem>>, vector<1x1x128xf32>
    %71 = vector.shape_cast %70 : vector<1x1x128xf32> to vector<1x128xf32>
    %72 = vector.broadcast %71 : vector<1x128xf32> to vector<8x128xf32>
    %73 = arith.addf %68, %72 : vector<8x128xf32>
    %c1_i32_39 = arith.constant 1 : i32
    %c2_i32_40 = arith.constant 2 : i32
    %74 = arith.muli %c1_i32_25, %c2_i32_40 : i32
    %75 = arith.addi %74, %c1_i32_39 : i32
    %76 = arith.truncf %73 : vector<8x128xf32> to vector<8x128xbf16>
    %77 = arith.index_cast %75 : i32 to index
    %c0_41 = arith.constant 0 : index
    %c0_42 = arith.constant 0 : index
    %78 = vector.load %arg2[%77, %c0_41, %c0_42] : memref<4x128x128xbf16, #tpu.memory_space<vmem>>, vector<1x128x128xbf16>
    %79 = vector.shape_cast %78 : vector<1x128x128xbf16> to vector<128x128xbf16>
    %cst_43 = arith.constant dense<0.000000e+00> : vector<8x128xf32>
    %80 = tpu.matmul %76, %79, %cst_43 {dimension_numbers = #tpu.dot_dimension_numbers<[1], [0], [0], [1], [0, 0, 1, 1], [], []>} : vector<8x128xbf16>, vector<128x128xbf16>, vector<8x128xf32> -> vector<8x128xf32>
    %81 = arith.index_cast %75 : i32 to index
    %c0_44 = arith.constant 0 : index
    %c0_45 = arith.constant 0 : index
    %82 = vector.load %arg3[%81, %c0_44, %c0_45] : memref<4x1x128xf32, #tpu.memory_space<vmem>>, vector<1x1x128xf32>
    %83 = vector.shape_cast %82 : vector<1x1x128xf32> to vector<1x128xf32>
    %84 = vector.broadcast %83 : vector<1x128xf32> to vector<8x128xf32>
    %85 = arith.addf %80, %84 : vector<8x128xf32>
    %cst_46 = arith.constant 0.000000e+00 : f32
    %86 = vector.broadcast %cst_46 : f32 to vector<8x128xf32>
    %87 = arith.maximumf %85, %86 : vector<8x128xf32>
    %88 = arith.truncf %87 : vector<8x128xf32> to vector<8x128xbf16>
    %89 = arith.index_cast %75 : i32 to index
    %c0_47 = arith.constant 0 : index
    %c0_48 = arith.constant 0 : index
    %90 = vector.load %arg4[%89, %c0_47, %c0_48] : memref<4x128x128xbf16, #tpu.memory_space<vmem>>, vector<1x128x128xbf16>
    %91 = vector.shape_cast %90 : vector<1x128x128xbf16> to vector<128x128xbf16>
    %cst_49 = arith.constant dense<0.000000e+00> : vector<8x128xf32>
    %92 = tpu.matmul %88, %91, %cst_49 {dimension_numbers = #tpu.dot_dimension_numbers<[1], [0], [0], [1], [0, 0, 1, 1], [], []>} : vector<8x128xbf16>, vector<128x128xbf16>, vector<8x128xf32> -> vector<8x128xf32>
    %93 = arith.index_cast %75 : i32 to index
    %c0_50 = arith.constant 0 : index
    %c0_51 = arith.constant 0 : index
    %94 = vector.load %arg5[%93, %c0_50, %c0_51] : memref<4x1x128xf32, #tpu.memory_space<vmem>>, vector<1x1x128xf32>
    %95 = vector.shape_cast %94 : vector<1x1x128xf32> to vector<1x128xf32>
    %96 = vector.broadcast %95 : vector<1x128xf32> to vector<8x128xf32>
    %97 = arith.addf %92, %96 : vector<8x128xf32>
    %c2_i32_52 = arith.constant 2 : i32
    %98 = arith.addf %97, %49 : vector<8x128xf32>
    %c2_i32_53 = arith.constant 2 : i32
    %99 = arith.mulf %98, %0 : vector<8x128xf32>
    %cst_54 = arith.constant 0.000000e+00 : f32
    %100 = vector.broadcast %cst_54 : f32 to vector<8x128xf32>
    %101 = arith.cmpf oeq, %99, %100 : vector<8x128xf32>
    %cst_55 = arith.constant -1.000000e+20 : f32
    %102 = vector.broadcast %cst_55 : f32 to vector<8x128xf32>
    %103 = arith.select %101, %102, %99 : vector<8x128xi1>, vector<8x128xf32>
    %c0_56 = arith.constant 0 : index
    %c0_57 = arith.constant 0 : index
    %104 = vector.load %arg6[%c0_56, %c0_57] : memref<8x128xf32, #tpu.memory_space<vmem>>, vector<8x128xf32>
    tpu.vector_store %arg6[%c0_56, %c0_57], %103 {strides = array<i32>} : memref<8x128xf32, #tpu.memory_space<vmem>>, vector<8x128xf32>,
    return
  }
  func.func @transform_0(%arg0: i32) -> (i32, i32) {
    %c0_i32 = arith.constant 0 : i32
    %c0_i32_0 = arith.constant 0 : i32
    return %arg0, %c0_i32 : i32, i32
  }
  func.func @transform_1(%arg0: i32) -> (i32, i32, i32) {
    %c0_i32 = arith.constant 0 : i32
    %c0_i32_0 = arith.constant 0 : i32
    %c0_i32_1 = arith.constant 0 : i32
    %c0_i32_2 = arith.constant 0 : i32
    return %c0_i32, %c0_i32_0, %c0_i32_1 : i32, i32, i32
  }
  func.func @transform_2(%arg0: i32) -> (i32, i32, i32) {
    %c0_i32 = arith.constant 0 : i32
    %c0_i32_0 = arith.constant 0 : i32
    %c0_i32_1 = arith.constant 0 : i32
    %c0_i32_2 = arith.constant 0 : i32
    return %c0_i32, %c0_i32_0, %c0_i32_1 : i32, i32, i32
  }
  func.func @transform_3(%arg0: i32) -> (i32, i32, i32) {
    %c0_i32 = arith.constant 0 : i32
    %c0_i32_0 = arith.constant 0 : i32
    %c0_i32_1 = arith.constant 0 : i32
    %c0_i32_2 = arith.constant 0 : i32
    return %c0_i32, %c0_i32_0, %c0_i32_1 : i32, i32, i32
  }
  func.func @transform_4(%arg0: i32) -> (i32, i32, i32) {
    %c0_i32 = arith.constant 0 : i32
    %c0_i32_0 = arith.constant 0 : i32
    %c0_i32_1 = arith.constant 0 : i32
    %c0_i32_2 = arith.constant 0 : i32
    return %c0_i32, %c0_i32_0, %c0_i32_1 : i32, i32, i32
  }
  func.func @transform_5(%arg0: i32) -> (i32, i32) {
    %c0_i32 = arith.constant 0 : i32
    %c0_i32_0 = arith.constant 0 : i32
    return %arg0, %c0_i32 : i32, i32
  }
}

module attributes {stable_mosaic.version = 11 : i64} {
  func.func @res_assort_kernel(%arg0: i32, %arg1: memref<8x128xf32, #tpu.memory_space<vmem>>, %arg2: memref<4x128x128xbf16, #tpu.memory_space<vmem>>, %arg3: memref<4x1x128xf32, #tpu.memory_space<vmem>>, %arg4: memref<4x128x128xbf16, #tpu.memory_space<vmem>>, %arg5: memref<4x1x128xf32, #tpu.memory_space<vmem>>, %arg6: memref<8x128xf32, #tpu.memory_space<vmem>>) attributes {dimension_semantics = [#tpu.dimension_semantics<parallel>], iteration_bounds = array<i64: 1>, scalar_prefetch = 0 : i64, scratch_operands = 0 : i64, tpu.core_type = #tpu.core_type<tc>, window_params = [{transform_indices = @transform_0, window_bounds = array<i64: 8, 128>}, {pipeline_mode = #tpu.pipeline_mode<synchronous>, transform_indices = @transform_1, window_bounds = array<i64: 4, 128, 128>}, {pipeline_mode = #tpu.pipeline_mode<synchronous>, transform_indices = @transform_2, window_bounds = array<i64: 4, 1, 128>}, {pipeline_mode = #tpu.pipeline_mode<synchronous>, transform_indices = @transform_3, window_bounds = array<i64: 4, 128, 128>}, {pipeline_mode = #tpu.pipeline_mode<synchronous>, transform_indices = @transform_4, window_bounds = array<i64: 4, 1, 128>}, {transform_indices = @transform_5, window_bounds = array<i64: 8, 128>}]} {
    %c0 = arith.constant 0 : index
    %c0_0 = arith.constant 0 : index
    %0 = vector.load %arg1[%c0, %c0_0] : memref<8x128xf32, #tpu.memory_space<vmem>>, vector<8x128xf32>
    %c0_i32 = arith.constant 0 : i32
    %c0_i32_1 = arith.constant 0 : i32
    %c2_i32 = arith.constant 2 : i32
    %1 = arith.muli %c0_i32, %c2_i32 : i32
    %2 = arith.addi %1, %c0_i32_1 : i32
    %3 = arith.truncf %0 : vector<8x128xf32> to vector<8x128xbf16>
    %4 = arith.index_cast %2 : i32 to index
    %c0_2 = arith.constant 0 : index
    %c0_3 = arith.constant 0 : index
    %5 = vector.load %arg2[%4, %c0_2, %c0_3] : memref<4x128x128xbf16, #tpu.memory_space<vmem>>, vector<1x128x128xbf16>
    %6 = vector.shape_cast %5 : vector<1x128x128xbf16> to vector<128x128xbf16>
    %cst = arith.constant dense<0.000000e+00> : vector<8x128xf32>
    %7 = tpu.matmul %3, %6, %cst {dimension_numbers = #tpu.dot_dimension_numbers<[1], [0], [0], [1], [0, 0, 1, 1], [], []>} : vector<8x128xbf16>, vector<128x128xbf16>, vector<8x128xf32> -> vector<8x128xf32>
    %8 = arith.index_cast %2 : i32 to index
    %c0_4 = arith.constant 0 : index
    %c0_5 = arith.constant 0 : index
    %9 = vector.load %arg3[%8, %c0_4, %c0_5] : memref<4x1x128xf32, #tpu.memory_space<vmem>>, vector<1x1x128xf32>
    %10 = vector.shape_cast %9 : vector<1x1x128xf32> to vector<1x128xf32>
    %11 = vector.broadcast %10 : vector<1x128xf32> to vector<8x128xf32>
    %12 = arith.addf %7, %11 : vector<8x128xf32>
    %cst_6 = arith.constant 0.000000e+00 : f32
    %13 = vector.broadcast %cst_6 : f32 to vector<8x128xf32>
    %14 = arith.maximumf %12, %13 : vector<8x128xf32>
    %15 = arith.truncf %14 : vector<8x128xf32> to vector<8x128xbf16>
    %16 = arith.index_cast %2 : i32 to index
    %c0_7 = arith.constant 0 : index
    %c0_8 = arith.constant 0 : index
    %17 = vector.load %arg4[%16, %c0_7, %c0_8] : memref<4x128x128xbf16, #tpu.memory_space<vmem>>, vector<1x128x128xbf16>
    %18 = vector.shape_cast %17 : vector<1x128x128xbf16> to vector<128x128xbf16>
    %cst_9 = arith.constant dense<0.000000e+00> : vector<8x128xf32>
    %19 = tpu.matmul %15, %18, %cst_9 {dimension_numbers = #tpu.dot_dimension_numbers<[1], [0], [0], [1], [0, 0, 1, 1], [], []>} : vector<8x128xbf16>, vector<128x128xbf16>, vector<8x128xf32> -> vector<8x128xf32>
    %20 = arith.index_cast %2 : i32 to index
    %c0_10 = arith.constant 0 : index
    %c0_11 = arith.constant 0 : index
    %21 = vector.load %arg5[%20, %c0_10, %c0_11] : memref<4x1x128xf32, #tpu.memory_space<vmem>>, vector<1x1x128xf32>
    %22 = vector.shape_cast %21 : vector<1x1x128xf32> to vector<1x128xf32>
    %23 = vector.broadcast %22 : vector<1x128xf32> to vector<8x128xf32>
    %24 = arith.addf %19, %23 : vector<8x128xf32>
    %c1_i32 = arith.constant 1 : i32
    %c2_i32_12 = arith.constant 2 : i32
    %25 = arith.muli %c0_i32, %c2_i32_12 : i32
    %26 = arith.addi %25, %c1_i32 : i32
    %27 = arith.truncf %24 : vector<8x128xf32> to vector<8x128xbf16>
    %28 = arith.index_cast %26 : i32 to index
    %c0_13 = arith.constant 0 : index
    %c0_14 = arith.constant 0 : index
    %29 = vector.load %arg2[%28, %c0_13, %c0_14] : memref<4x128x128xbf16, #tpu.memory_space<vmem>>, vector<1x128x128xbf16>
    %30 = vector.shape_cast %29 : vector<1x128x128xbf16> to vector<128x128xbf16>
    %cst_15 = arith.constant dense<0.000000e+00> : vector<8x128xf32>
    %31 = tpu.matmul %27, %30, %cst_15 {dimension_numbers = #tpu.dot_dimension_numbers<[1], [0], [0], [1], [0, 0, 1, 1], [], []>} : vector<8x128xbf16>, vector<128x128xbf16>, vector<8x128xf32> -> vector<8x128xf32>
    %32 = arith.index_cast %26 : i32 to index
    %c0_16 = arith.constant 0 : index
    %c0_17 = arith.constant 0 : index
    %33 = vector.load %arg3[%32, %c0_16, %c0_17] : memref<4x1x128xf32, #tpu.memory_space<vmem>>, vector<1x1x128xf32>
    %34 = vector.shape_cast %33 : vector<1x1x128xf32> to vector<1x128xf32>
    %35 = vector.broadcast %34 : vector<1x128xf32> to vector<8x128xf32>
    %36 = arith.addf %31, %35 : vector<8x128xf32>
    %cst_18 = arith.constant 0.000000e+00 : f32
    %37 = vector.broadcast %cst_18 : f32 to vector<8x128xf32>
    %38 = arith.maximumf %36, %37 : vector<8x128xf32>
    %39 = arith.truncf %38 : vector<8x128xf32> to vector<8x128xbf16>
    %40 = arith.index_cast %26 : i32 to index
    %c0_19 = arith.constant 0 : index
    %c0_20 = arith.constant 0 : index
    %41 = vector.load %arg4[%40, %c0_19, %c0_20] : memref<4x128x128xbf16, #tpu.memory_space<vmem>>, vector<1x128x128xbf16>
    %42 = vector.shape_cast %41 : vector<1x128x128xbf16> to vector<128x128xbf16>
    %cst_21 = arith.constant dense<0.000000e+00> : vector<8x128xf32>
    %43 = tpu.matmul %39, %42, %cst_21 {dimension_numbers = #tpu.dot_dimension_numbers<[1], [0], [0], [1], [0, 0, 1, 1], [], []>} : vector<8x128xbf16>, vector<128x128xbf16>, vector<8x128xf32> -> vector<8x128xf32>
    %44 = arith.index_cast %26 : i32 to index
    %c0_22 = arith.constant 0 : index
    %c0_23 = arith.constant 0 : index
    %45 = vector.load %arg5[%44, %c0_22, %c0_23] : memref<4x1x128xf32, #tpu.memory_space<vmem>>, vector<1x1x128xf32>
    %46 = vector.shape_cast %45 : vector<1x1x128xf32> to vector<1x128xf32>
    %47 = vector.broadcast %46 : vector<1x128xf32> to vector<8x128xf32>
    %48 = arith.addf %43, %47 : vector<8x128xf32>
    %c2_i32_24 = arith.constant 2 : i32
    %49 = arith.addf %48, %0 : vector<8x128xf32>
    %c1_i32_25 = arith.constant 1 : i32
    %c0_i32_26 = arith.constant 0 : i32
    %c2_i32_27 = arith.constant 2 : i32
    %50 = arith.muli %c1_i32_25, %c2_i32_27 : i32
    %51 = arith.addi %50, %c0_i32_26 : i32
    %52 = arith.truncf %49 : vector<8x128xf32> to vector<8x128xbf16>
    %53 = arith.index_cast %51 : i32 to index
    %c0_28 = arith.constant 0 : index
    %c0_29 = arith.constant 0 : index
    %54 = vector.load %arg2[%53, %c0_28, %c0_29] : memref<4x128x128xbf16, #tpu.memory_space<vmem>>, vector<1x128x128xbf16>
    %55 = vector.shape_cast %54 : vector<1x128x128xbf16> to vector<128x128xbf16>
    %cst_30 = arith.constant dense<0.000000e+00> : vector<8x128xf32>
    %56 = tpu.matmul %52, %55, %cst_30 {dimension_numbers = #tpu.dot_dimension_numbers<[1], [0], [0], [1], [0, 0, 1, 1], [], []>} : vector<8x128xbf16>, vector<128x128xbf16>, vector<8x128xf32> -> vector<8x128xf32>
    %57 = arith.index_cast %51 : i32 to index
    %c0_31 = arith.constant 0 : index
    %c0_32 = arith.constant 0 : index
    %58 = vector.load %arg3[%57, %c0_31, %c0_32] : memref<4x1x128xf32, #tpu.memory_space<vmem>>, vector<1x1x128xf32>
    %59 = vector.shape_cast %58 : vector<1x1x128xf32> to vector<1x128xf32>
    %60 = vector.broadcast %59 : vector<1x128xf32> to vector<8x128xf32>
    %61 = arith.addf %56, %60 : vector<8x128xf32>
    %cst_33 = arith.constant 0.000000e+00 : f32
    %62 = vector.broadcast %cst_33 : f32 to vector<8x128xf32>
    %63 = arith.maximumf %61, %62 : vector<8x128xf32>
    %64 = arith.truncf %63 : vector<8x128xf32> to vector<8x128xbf16>
    %65 = arith.index_cast %51 : i32 to index
    %c0_34 = arith.constant 0 : index
    %c0_35 = arith.constant 0 : index
    %66 = vector.load %arg4[%65, %c0_34, %c0_35] : memref<4x128x128xbf16, #tpu.memory_space<vmem>>, vector<1x128x128xbf16>
    %67 = vector.shape_cast %66 : vector<1x128x128xbf16> to vector<128x128xbf16>
    %cst_36 = arith.constant dense<0.000000e+00> : vector<8x128xf32>
    %68 = tpu.matmul %64, %67, %cst_36 {dimension_numbers = #tpu.dot_dimension_numbers<[1], [0], [0], [1], [0, 0, 1, 1], [], []>} : vector<8x128xbf16>, vector<128x128xbf16>, vector<8x128xf32> -> vector<8x128xf32>
    %69 = arith.index_cast %51 : i32 to index
    %c0_37 = arith.constant 0 : index
    %c0_38 = arith.constant 0 : index
    %70 = vector.load %arg5[%69, %c0_37, %c0_38] : memref<4x1x128xf32, #tpu.memory_space<vmem>>, vector<1x1x128xf32>
    %71 = vector.shape_cast %70 : vector<1x1x128xf32> to vector<1x128xf32>
    %72 = vector.broadcast %71 : vector<1x128xf32> to vector<8x128xf32>
    %73 = arith.addf %68, %72 : vector<8x128xf32>
    %c1_i32_39 = arith.constant 1 : i32
    %c2_i32_40 = arith.constant 2 : i32
    %74 = arith.muli %c1_i32_25, %c2_i32_40 : i32
    %75 = arith.addi %74, %c1_i32_39 : i32
    %76 = arith.truncf %73 : vector<8x128xf32> to vector<8x128xbf16>
    %77 = arith.index_cast %75 : i32 to index
    %c0_41 = arith.constant 0 : index
    %c0_42 = arith.constant 0 : index
    %78 = vector.load %arg2[%77, %c0_41, %c0_42] : memref<4x128x128xbf16, #tpu.memory_space<vmem>>, vector<1x128x128xbf16>
    %79 = vector.shape_cast %78 : vector<1x128x128xbf16> to vector<128x128xbf16>
    %cst_43 = arith.constant dense<0.000000e+00> : vector<8x128xf32>
    %80 = tpu.matmul %76, %79, %cst_43 {dimension_numbers = #tpu.dot_dimension_numbers<[1], [0], [0], [1], [0, 0, 1, 1], [], []>} : vector<8x128xbf16>, vector<128x128xbf16>, vector<8x128xf32> -> vector<8x128xf32>
    %81 = arith.index_cast %75 : i32 to index
    %c0_44 = arith.constant 0 : index
    %c0_45 = arith.constant 0 : index
    %82 = vector.load %arg3[%81, %c0_44, %c0_45] : memref<4x1x128xf32, #tpu.memory_space<vmem>>, vector<1x1x128xf32>
    %83 = vector.shape_cast %82 : vector<1x1x128xf32> to vector<1x128xf32>
    %84 = vector.broadcast %83 : vector<1x128xf32> to vector<8x128xf32>
    %85 = arith.addf %80, %84 : vector<8x128xf32>
    %cst_46 = arith.constant 0.000000e+00 : f32
    %86 = vector.broadcast %cst_46 : f32 to vector<8x128xf32>
    %87 = arith.maximumf %85, %86 : vector<8x128xf32>
    %88 = arith.truncf %87 : vector<8x128xf32> to vector<8x128xbf16>
    %89 = arith.index_cast %75 : i32 to index
    %c0_47 = arith.constant 0 : index
    %c0_48 = arith.constant 0 : index
    %90 = vector.load %arg4[%89, %c0_47, %c0_48] : memref<4x128x128xbf16, #tpu.memory_space<vmem>>, vector<1x128x128xbf16>
    %91 = vector.shape_cast %90 : vector<1x128x128xbf16> to vector<128x128xbf16>
    %cst_49 = arith.constant dense<0.000000e+00> : vector<8x128xf32>
    %92 = tpu.matmul %88, %91, %cst_49 {dimension_numbers = #tpu.dot_dimension_numbers<[1], [0], [0], [1], [0, 0, 1, 1], [], []>} : vector<8x128xbf16>, vector<128x128xbf16>, vector<8x128xf32> -> vector<8x128xf32>
    %93 = arith.index_cast %75 : i32 to index
    %c0_50 = arith.constant 0 : index
    %c0_51 = arith.constant 0 : index
    %94 = vector.load %arg5[%93, %c0_50, %c0_51] : memref<4x1x128xf32, #tpu.memory_space<vmem>>, vector<1x1x128xf32>
    %95 = vector.shape_cast %94 : vector<1x1x128xf32> to vector<1x128xf32>
    %96 = vector.broadcast %95 : vector<1x128xf32> to vector<8x128xf32>
    %97 = arith.addf %92, %96 : vector<8x128xf32>
    %c2_i32_52 = arith.constant 2 : i32
    %98 = arith.addf %97, %49 : vector<8x128xf32>
    %c2_i32_53 = arith.constant 2 : i32
    %99 = arith.mulf %98, %0 : vector<8x128xf32>
    %cst_54 = arith.constant 0.000000e+00 : f32
    %100 = vector.broadcast %cst_54 : f32 to vector<8x128xf32>
    %101 = arith.cmpf oeq, %99, %100 : vector<8x128xf32>
    %cst_55 = arith.constant -1.000000e+20 : f32
    %102 = vector.broadcast %cst_55 : f32 to vector<8x128xf32>
    %103 = arith.select %101, %102, %99 : vector<8x128xi1>, vector<8x128xf32>
    %c0_56 = arith.constant 0 : index
    %c0_57 = arith.constant 0 : index
    %104 = vector.load %arg6[%c0_56, %c0_57] : memref<8x128xf32, #tpu.memory_space<vmem>>, vector<8x128xf32>
    tpu.vector_store %arg6[%c0_56, %c0_57], %103 {strides = array<i32>} : memref<8x128xf32, #tpu.memory_space<vmem>>, vector<8x128xf32>,
    return
  }
  func.func @transform_0(%arg0: i32) -> (i32, i32) {
    %c0_i32 = arith.constant 0 : i32
    %c0_i32_0 = arith.constant 0 : i32
    return %arg0, %c0_i32 : i32, i32
  }
  func.func @transform_1(%arg0: i32) -> (i32, i32, i32) {
    %c0_i32 = arith.constant 0 : i32
    %c0_i32_0 = arith.constant 0 : i32
    %c0_i32_1 = arith.constant 0 : i32
    %c0_i32_2 = arith.constant 0 : i32
    return %c0_i32, %c0_i32_0, %c0_i32_1 : i32, i32, i32
  }
  func.func @transform_2(%arg0: i32) -> (i32, i32, i32) {
    %c0_i32 = arith.constant 0 : i32
    %c0_i32_0 = arith.constant 0 : i32
    %c0_i32_1 = arith.constant 0 : i32
    %c0_i32_2 = arith.constant 0 : i32
    return %c0_i32, %c0_i32_0, %c0_i32_1 : i32, i32, i32
  }
  func.func @transform_3(%arg0: i32) -> (i32, i32, i32) {
    %c0_i32 = arith.constant 0 : i32
    %c0_i32_0 = arith.constant 0 : i32
    %c0_i32_1 = arith.constant 0 : i32
    %c0_i32_2 = arith.constant 0 : i32
    return %c0_i32, %c0_i32_0, %c0_i32_1 : i32, i32, i32
  }
  func.func @transform_4(%arg0: i32) -> (i32, i32, i32) {
    %c0_i32 = arith.constant 0 : i32
    %c0_i32_0 = arith.constant 0 : i32
    %c0_i32_1 = arith.constant 0 : i32
    %c0_i32_2 = arith.constant 0 : i32
    return %c0_i32, %c0_i32_0, %c0_i32_1 : i32, i32, i32
  }
  func.func @transform_5(%arg0: i32) -> (i32, i32) {
    %c0_i32 = arith.constant 0 : i32
    %c0_i32_0 = arith.constant 0 : i32
    return %arg0, %c0_i32 : i32, i32
  }
}

</mosaic_0001>

<bundles_post_ra>
// kernel: tpu_custom_call.1
= control target key start
LH: loop header
LB: loop body
LE: loop exit
PB: predicated region body
PF: predicated region fallthrough
CT: control target
= control target key end

     0   :  { %10 = vsyncpa [#allocation3], 0  ;;  %s1679_s0 = inlined_call_operand.hbm [shape: f32[8,128], index: 0, kind: input, shape index: {}]   ;;  %s1680_s1 = inlined_call_operand.hbm [shape: bf16[4,128,128], index: 1, kind: input, shape index: {}]   ;;  %s1681_s2 = inlined_call_operand.vmem [shape: f32[4,1,128], index: 2, kind: input, shape index: {}]   ;;  %s1682_s3 = inlined_call_operand.hbm [shape: bf16[4,128,128], index: 3, kind: input, shape index: {}]   ;;  %s1683_s4 = inlined_call_operand.vmem [shape: f32[4,1,128], index: 4, kind: input, shape index: {}]   ;;  %s1684_s5 = inlined_call_operand.hbm [shape: f32[8,128], index: 5, kind: output, shape index: {}]  }
   0x1   :  { %11 = vsyncpa [#allocation6], 0 }
   0x2   :  { %12 = vsyncpa [#allocation4], 0  ;;  %s1472_s18 = smov [#allocation5]   ;;  %s1378_s22 = scalar_lea.hbm %s1680_s1, 4096 }
   0x3   :  { %s28_s19 = sshll.u32 %s1472_s18, 4  ;;  %p1379_p0 = scmp.ne.s32.totalorder %s1680_s1, %s1378_s22  ;;  %s29_s19 = int_to_ptr.vmem [resolvable:$true] %s28_s19 }
   0x4   :  { %p1382_p1 = scmp.lt.u32.totalorder %s1378_s22, %s1680_s1 }
   0x6   :  { %p1384_p2 = pnand %p1382_p1, %p1379_p0 }
   0x8   :  { %1387 = shalt.err (!%p1384_p2)
}
   0x9   :  { %s1388_s27 = scalar_lea.vmem %s29_s19, 4096  ;;  %p1393_p4 = scmp.lt.s32.totalorder %s29_s19, %s29_s19 }
   0xa   :  { %p1389_p3 = scmp.ne.s32.totalorder %s29_s19, %s1388_s27  ;;  %p1394_p5 = scmp.lt.s32.totalorder %s1388_s27, %s1388_s27 }
   0xc   :  { %p1395_p6 = por %p1394_p5, %p1393_p4 }
   0xe   :  { %p1396_p7 = pnand %p1395_p6, %p1389_p3 }
  0x10   :  { %1399 = shalt.err (!%p1396_p7)
}
  0x11   :  { %s1473_s28 = smov 64   ;;  %s1474_s29 = smov 4  }
  0x12   :  { %34 = dma.hbm_to_vmem [thread:$0]  %s1680_s1, 4096, %s29_s19, [#allocation6], %s1473_s28, %s1473_s28, %s1474_s29  }
  0x13   :  { %s1475_s7 = smov [#allocation2]   ;;  %s1476_s9 = smov [#allocation7]  }
  0x14   :  { %s19_s8 = sshll.u32 %s1475_s7, 4  ;;  %s42_s10 = sshll.u32 %s1476_s9, 4  ;;  %s20_s8 = int_to_ptr.vmem [resolvable:$true] %s19_s8  ;;  %s43_s10 = int_to_ptr.vmem [resolvable:$true] %s42_s10 }
  0x15   :  { %s1400_s13 = scalar_lea.hbm %s1679_s0, 128 }
  0x16   :  { %p1401_p8 = scmp.ne.s32.totalorder %s1679_s0, %s1400_s13  ;;  %p1404_p9 = scmp.lt.u32.totalorder %s1400_s13, %s1679_s0 }
  0x18   :  { %p1406_p10 = pnand %p1404_p9, %p1401_p8 }
  0x1a   :  { %1409 = shalt.err (!%p1406_p10)
}
  0x1b   :  { %s1410_s1 = scalar_lea.vmem %s20_s8, 128  ;;  %p1415_p12 = scmp.lt.s32.totalorder %s20_s8, %s20_s8 }
  0x1c   :  { %p1411_p11 = scmp.ne.s32.totalorder %s20_s8, %s1410_s1  ;;  %p1416_p13 = scmp.lt.s32.totalorder %s1410_s1, %s1410_s1 }
  0x1e   :  { %p1417_p0 = por %p1416_p13, %p1415_p12 }
  0x20   :  { %p1418_p1 = pnand %p1417_p0, %p1411_p11 }
  0x22   :  { %1421 = shalt.err (!%p1418_p1)
}
  0x23   :  { %22 = dma.hbm_to_vmem [thread:$0]  %s1679_s0, 128, %s20_s8, [#allocation3]  }
  0x24   :  { %s1422_s22 = scalar_lea.hbm %s1682_s3, 4096 }
  0x25   :  { %p1423_p2 = scmp.ne.s32.totalorder %s1682_s3, %s1422_s22  ;;  %p1426_p3 = scmp.lt.u32.totalorder %s1422_s22, %s1682_s3 }
  0x27   :  { %p1428_p4 = pnand %p1426_p3, %p1423_p2 }
  0x29   :  { %1431 = shalt.err (!%p1428_p4)
}
  0x2a   :  { %s1432_s27 = scalar_lea.vmem %s43_s10, 4096  ;;  %p1437_p6 = scmp.lt.s32.totalorder %s43_s10, %s43_s10 }
  0x2b   :  { %p1433_p5 = scmp.ne.s32.totalorder %s43_s10, %s1432_s27  ;;  %p1438_p7 = scmp.lt.s32.totalorder %s1432_s27, %s1432_s27 }
  0x2d   :  { %p1439_p8 = por %p1438_p7, %p1437_p6 }
  0x2f   :  { %p1440_p9 = pnand %p1439_p8, %p1433_p5 }
  0x31   :  { %1443 = shalt.err (!%p1440_p9)
}
  0x32   :  { %48 = dma.hbm_to_vmem [thread:$0]  %s1682_s3, 4096, %s43_s10, [#allocation6], %s1473_s28, %s1473_s28, %s1474_s29  }
  0x33   :  { %1466 = dma.done.wait [#allocation3], 128  }
  0x34   :  { %1467 = vsyncadd [#allocation3], 4294967168 }
  0x35   :  { %1468 = dma.done.wait [#allocation6], 8192  }
  0x36   :  { %1469 = vsyncadd [#allocation6], 4294959104  ;;  %v1477_v0 = vmov 0.0   ;;  %vm1478_vm0 = vmmov 0   ;;  %v1314_v1 = vld [vmem:[#allocation5] sm:$0xff]   ;;  %v1315_v2 = vld [vmem:[#allocation5 + $0x8] sm:$0xff]  }
  0x37   :  { %1146 = vmatprep.subr.bf16.mxu0 %v1477_v0  ;;  %1162 = vmatprep.mubr.msk.bf16.mxu0 %vm1478_vm0, %v1477_v0  ;;  %v1316_v3 = vld [vmem:[#allocation5 + $0x10] sm:$0xff]   ;;  %v1322_v4 = vld [vmem:[#allocation7] sm:$0xff]   ;;  %v1317_v5 = vld [vmem:[#allocation5 + $0x18] sm:$0xff]  }
  0x38   :  { %1166 = vmatprep.subr.bf16.mxu1 %v1477_v0  ;;  %1182 = vmatprep.mubr.msk.bf16.mxu1 %vm1478_vm0, %v1477_v0  ;;  %v1323_v6 = vld [vmem:[#allocation7 + $0x8] sm:$0xff]   ;;  %v1318_v7 = vld [vmem:[#allocation5 + $0x20] sm:$0xff]   ;;  %v1324_v8 = vld [vmem:[#allocation7 + $0x10] sm:$0xff]  }
  0x39   :  { %1147 = vmatpush3.bf16.msra.mxu0 %v1314_v1  ;;  %1167 = vmatpush3.bf16.msra.mxu1 %v1322_v4  ;;  %v1319_v9 = vld [vmem:[#allocation5 + $0x28] sm:$0xff]   ;;  %v1325_v10 = vld [vmem:[#allocation7 + $0x18] sm:$0xff]   ;;  %v1320_v11 = vld [vmem:[#allocation5 + $0x30] sm:$0xff]  }
  0x3a   :  { %1148 = vmatprep.subr.bf16.mxu0 %v1477_v0  ;;  %1168 = vmatprep.subr.bf16.mxu1 %v1477_v0  ;;  %v1326_v12 = vld [vmem:[#allocation7 + $0x20] sm:$0xff]   ;;  %v1321_v13 = vld [vmem:[#allocation5 + $0x38] sm:$0xff]   ;;  %v1327_v15 = vld [vmem:[#allocation7 + $0x28] sm:$0xff]  }
  0x3b   :  { %v1567_v14 = vld [vmem:[#allocation2] sm:$0xff]  ;;  %v1328_v17 = vld [vmem:[#allocation7 + $0x30] sm:$0xff]   ;;  %v1330_v19 = vld [vmem:[#allocation5 + $0x40] sm:$0xff]  }
  0x3c   :  { %v62_v16 = vpack.c.bf16 %v1567_v14, %v1567_v14  ;;  %v1329_v18 = vld [vmem:[#allocation7 + $0x38] sm:$0xff]   ;;  %v1331_v20 = vld [vmem:[#allocation5 + $0x48] sm:$0xff]   ;;  %v1332_v21 = vld [vmem:[#allocation5 + $0x50] sm:$0xff]  }
  0x3d   :  { %1149 = vmatpush3.bf16.msra.mxu0 %v1315_v2  ;;  %1169 = vmatpush3.bf16.msra.mxu1 %v1323_v6  ;;  %v1333_v22 = vld [vmem:[#allocation5 + $0x58] sm:$0xff]   ;;  %v1334_v23 = vld [vmem:[#allocation5 + $0x60] sm:$0xff]   ;;  %v1335_v24 = vld [vmem:[#allocation5 + $0x68] sm:$0xff]  }
  0x3e   :  { %1150 = vmatprep.subr.bf16.mxu0 %v1477_v0  ;;  %1170 = vmatprep.subr.bf16.mxu1 %v1477_v0  ;;  %v1336_v25 = vld [vmem:[#allocation5 + $0x70] sm:$0xff]   ;;  %v996_v26 = vld [vmem:[%s1681_s2] ss:$0 sm:$0xff]  ;;  %v1338_v35 = vld [vmem:[#allocation7 + $0x40] sm:$0xff]  }
  0x3f   :  { %v1337_v34 = vld [vmem:[#allocation5 + $0x78] sm:$0xff]   ;;  %v1339_v36 = vld [vmem:[#allocation7 + $0x48] sm:$0xff]   ;;  %v1340_v37 = vld [vmem:[#allocation7 + $0x50] sm:$0xff]  }
  0x40   :  { %v1341_v38 = vld [vmem:[#allocation7 + $0x58] sm:$0xff]   ;;  %v1342_v39 = vld [vmem:[#allocation7 + $0x60] sm:$0xff]   ;;  %v1343_v40 = vld [vmem:[#allocation7 + $0x68] sm:$0xff]  }
  0x41   :  { %1151 = vmatpush3.bf16.msra.mxu0 %v1316_v3  ;;  %1171 = vmatpush3.bf16.msra.mxu1 %v1324_v8  ;;  %v1005_v41 = vld [vmem:[%s1683_s4] ss:$0 sm:$0xff]  ;;  %v1344_v48 = vld [vmem:[#allocation7 + $0x70] sm:$0xff]   ;;  %v1346_v50 = vld [vmem:[#allocation5 + $0x80] sm:$0xff]  }
  0x42   :  { %1152 = vmatprep.subr.bf16.mxu0 %v1477_v0  ;;  %1172 = vmatprep.subr.bf16.mxu1 %v1477_v0  ;;  %v1345_v49 = vld [vmem:[#allocation7 + $0x78] sm:$0xff]   ;;  %v1347_v51 = vld [vmem:[#allocation5 + $0x88] sm:$0xff]   ;;  %v1348_v52 = vld [vmem:[#allocation5 + $0x90] sm:$0xff]  }
  0x43   :  { %v1349_v53 = vld [vmem:[#allocation5 + $0x98] sm:$0xff]   ;;  %v1350_v54 = vld [vmem:[#allocation5 + $0xa0] sm:$0xff]   ;;  %v1351_v55 = vld [vmem:[#allocation5 + $0xa8] sm:$0xff]  }
  0x44   :  { %v1015_v56 = vld [vmem:[%s1681_s2 + $0x1] ss:$0 sm:$0xff]  ;;  %v1352_v1 = vld [vmem:[#allocation5 + $0xb0] sm:$0xff]   ;;  %v1354_v3 = vld [vmem:[#allocation7 + $0x80] sm:$0xff]  }
  0x45   :  { %1153 = vmatpush3.bf16.msra.mxu0 %v1317_v5  ;;  %1173 = vmatpush3.bf16.msra.mxu1 %v1325_v10  ;;  %v1353_v2 = vld [vmem:[#allocation5 + $0xb8] sm:$0xff]   ;;  %v1355_v4 = vld [vmem:[#allocation7 + $0x88] sm:$0xff]   ;;  %v1356_v5 = vld [vmem:[#allocation7 + $0x90] sm:$0xff]  }
  0x46   :  { %1154 = vmatprep.subr.bf16.mxu0 %v1477_v0  ;;  %1174 = vmatprep.subr.bf16.mxu1 %v1477_v0  ;;  %v1357_v6 = vld [vmem:[#allocation7 + $0x98] sm:$0xff]   ;;  %v1359_v8 = vld [vmem:[#allocation7 + $0xa8] sm:$0xff]  }
  0x49   :  { %1155 = vmatpush3.bf16.msra.mxu0 %v1318_v7  ;;  %1175 = vmatpush3.bf16.msra.mxu1 %v1326_v12  ;;  %v1358_v7 = vld [vmem:[#allocation7 + $0xa0] sm:$0xff]  }
  0x4a   :  { %1156 = vmatprep.subr.bf16.mxu0 %v1477_v0  ;;  %1176 = vmatprep.subr.bf16.mxu1 %v1477_v0 }
  0x4d   :  { %1157 = vmatpush3.bf16.msra.mxu0 %v1319_v9  ;;  %1177 = vmatpush3.bf16.msra.mxu1 %v1327_v15  ;;  %v1025_v9 = vld [vmem:[%s1683_s4 + $0x1] ss:$0 sm:$0xff] }
  0x4e   :  { %1158 = vmatprep.subr.bf16.mxu0 %v1477_v0  ;;  %1178 = vmatprep.subr.bf16.mxu1 %v1477_v0 }
  0x51   :  { %1159 = vmatpush3.bf16.msra.mxu0 %v1320_v11  ;;  %1179 = vmatpush3.bf16.msra.mxu1 %v1328_v17 }
  0x52   :  { %1160 = vmatprep.subr.bf16.mxu0 %v1477_v0  ;;  %1180 = vmatprep.subr.bf16.mxu1 %v1477_v0 }
  0x55   :  { %1161 = vmatpush3.bf16.msra.mxu0 %v1321_v13  ;;  %1181 = vmatpush3.bf16.msra.mxu1 %v1329_v18  ;;  %v1360_v18 = vld [vmem:[#allocation7 + $0xb0] sm:$0xff]  }
  0x56   :  { %1186 = vmatprep.subr.bf16.mxu0 %v1477_v0  ;;  %1206 = vmatprep.subr.bf16.mxu1 %v1477_v0 }
  0x58   :  { %1163 = vmatmul.mubr.bf16.vlgmr.msra.gmra.mrb[0].mxu0 %v62_v16 }
  0x59   :  { %1202 = vmatprep.mubr.msk.bf16.mxu0 %vm1478_vm0, %v1477_v0  ;;  %1187 = vmatpush3.bf16.msra.mxu0 %v1330_v19  ;;  %v1361_v19 = vld [vmem:[#allocation7 + $0xb8] sm:$0xff]  }
  0x5a   :  { %1188 = vmatprep.subr.bf16.mxu0 %v1477_v0 }
  0x5d   :  { %1189 = vmatpush3.bf16.msra.mxu0 %v1331_v20  ;;  %v1362_v20 = vld [vmem:[#allocation5 + $0xc0] sm:$0xff]  }
  0x5e   :  { %1190 = vmatprep.subr.bf16.mxu0 %v1477_v0 }
  0x61   :  { %1191 = vmatpush3.bf16.msra.mxu0 %v1332_v21  ;;  %v1363_v21 = vld [vmem:[#allocation5 + $0xc8] sm:$0xff]  }
  0x62   :  { %1192 = vmatprep.subr.bf16.mxu0 %v1477_v0 }
  0x65   :  { %1193 = vmatpush3.bf16.msra.mxu0 %v1333_v22  ;;  %v1364_v22 = vld [vmem:[#allocation5 + $0xd0] sm:$0xff]  }
  0x66   :  { %1194 = vmatprep.subr.bf16.mxu0 %v1477_v0 }
  0x69   :  { %1195 = vmatpush3.bf16.msra.mxu0 %v1334_v23  ;;  %v1365_v23 = vld [vmem:[#allocation5 + $0xd8] sm:$0xff]  }
  0x6a   :  { %1196 = vmatprep.subr.bf16.mxu0 %v1477_v0 }
  0x6d   :  { %1197 = vmatpush3.bf16.msra.mxu0 %v1335_v24  ;;  %v1366_v24 = vld [vmem:[#allocation5 + $0xe0] sm:$0xff]  }
  0x6e   :  { %1198 = vmatprep.subr.bf16.mxu0 %v1477_v0 }
  0x71   :  { %1199 = vmatpush3.bf16.msra.mxu0 %v1336_v25  ;;  %v1367_v25 = vld [vmem:[#allocation5 + $0xe8] sm:$0xff]  }
  0x72   :  { %1200 = vmatprep.subr.bf16.mxu0 %v1477_v0 }
  0x75   :  { %1201 = vmatpush3.bf16.msra.mxu0 %v1337_v34 }
  0x76   :  { %1226 = vmatprep.subr.bf16.mxu0 %v1477_v0 }
 0x12b   :  { %v168_v27 = vpop.f32.mrb[0].mxu0 }
 0x12c   :  { %v169_v28 = vadd.f32 %v996_v26, %v168_v27  ;;  %v1164_v29 = vpop.f32.mrb[1].mxu0  ;;  %v1368_v26 = vld [vmem:[#allocation5 + $0xf0] sm:$0xff]   ;;  %v1035_v27 = vld [vmem:[%s1681_s2 + $0x2] ss:$0 sm:$0xff] }
 0x12d   :  { %v171_v30 = vpop.f32.mrb[2].mxu0 }
 0x12e   :  { %v174_v31 = vmax.f32 %v169_v28, 0.0  ;;  %v1165_v32 = vpop.f32.mrb[3].mxu0 }
 0x130   :  { %v175_v33 = vpack.c.bf16 %v174_v31, %v174_v31 }
 0x132   :  { %1183 = vmatmul.mubr.bf16.vlgmr.msra.gmra.mrb[0].mxu1 %v175_v33 }
 0x133   :  { %1222 = vmatprep.mubr.msk.bf16.mxu1 %vm1478_vm0, %v1477_v0  ;;  %1207 = vmatpush3.bf16.msra.mxu1 %v1338_v35  ;;  %v1369_v35 = vld [vmem:[#allocation5 + $0xf8] sm:$0xff]  }
 0x134   :  { %1208 = vmatprep.subr.bf16.mxu1 %v1477_v0 }
 0x137   :  { %1209 = vmatpush3.bf16.msra.mxu1 %v1339_v36  ;;  %v1370_v36 = vld [vmem:[#allocation7 + $0xc0] sm:$0xff]  }
 0x138   :  { %1210 = vmatprep.subr.bf16.mxu1 %v1477_v0 }
 0x13b   :  { %1211 = vmatpush3.bf16.msra.mxu1 %v1340_v37  ;;  %v1371_v37 = vld [vmem:[#allocation7 + $0xc8] sm:$0xff]  }
 0x13c   :  { %1212 = vmatprep.subr.bf16.mxu1 %v1477_v0 }
 0x13f   :  { %1213 = vmatpush3.bf16.msra.mxu1 %v1341_v38  ;;  %v1372_v38 = vld [vmem:[#allocation7 + $0xd0] sm:$0xff]  }
 0x140   :  { %1214 = vmatprep.subr.bf16.mxu1 %v1477_v0 }
 0x143   :  { %1215 = vmatpush3.bf16.msra.mxu1 %v1342_v39  ;;  %v1373_v39 = vld [vmem:[#allocation7 + $0xd8] sm:$0xff]  }
 0x144   :  { %1216 = vmatprep.subr.bf16.mxu1 %v1477_v0 }
 0x147   :  { %1217 = vmatpush3.bf16.msra.mxu1 %v1343_v40  ;;  %v1374_v40 = vld [vmem:[#allocation7 + $0xe0] sm:$0xff]  }
 0x148   :  { %1218 = vmatprep.subr.bf16.mxu1 %v1477_v0 }
 0x14b   :  { %1219 = vmatpush3.bf16.msra.mxu1 %v1344_v48 }
 0x14c   :  { %1220 = vmatprep.subr.bf16.mxu1 %v1477_v0 }
 0x14f   :  { %1221 = vmatpush3.bf16.msra.mxu1 %v1345_v49  ;;  %v1376_v49 = vld [vmem:[#allocation7 + $0xf0] sm:$0xff]  }
 0x150   :  { %1246 = vmatprep.subr.bf16.mxu1 %v1477_v0 }
 0x205   :  { %v281_v42 = vpop.f32.mrb[0].mxu1 }
 0x206   :  { %v282_v43 = vadd.f32 %v1005_v41, %v281_v42  ;;  %v1184_v44 = vpop.f32.mrb[1].mxu1  ;;  %v1375_v41 = vld [vmem:[#allocation7 + $0xe8] sm:$0xff]   ;;  %v1045_v42 = vld [vmem:[%s1683_s4 + $0x2] ss:$0 sm:$0xff] }
 0x207   :  { %v284_v45 = vpop.f32.mrb[2].mxu1 }
 0x208   :  { %v287_v46 = vpack.c.bf16 %v282_v43, %v282_v43  ;;  %v1185_v47 = vpop.f32.mrb[3].mxu1 }
 0x20a   :  { %1203 = vmatmul.mubr.bf16.vlgmr.msra.gmra.mrb[4].mxu0 %v287_v46 }
 0x20b   :  { %1242 = vmatprep.mubr.msk.bf16.mxu0 %vm1478_vm0, %v1477_v0  ;;  %1227 = vmatpush3.bf16.msra.mxu0 %v1346_v50  ;;  %v1377_v50 = vld [vmem:[#allocation7 + $0xf8] sm:$0xff]  }
 0x20c   :  { %1228 = vmatprep.subr.bf16.mxu0 %v1477_v0 }
 0x20f   :  { %1229 = vmatpush3.bf16.msra.mxu0 %v1347_v51  ;;  %v1055_v51 = vld [vmem:[%s1681_s2 + $0x3] ss:$0 sm:$0xff]  ;;  %s1479_s2 = smov [#allocation8]  }
 0x210   :  { %1230 = vmatprep.subr.bf16.mxu0 %v1477_v0  ;;  %s986_s18 = sshll.u32 %s1479_s2, 4  ;;  %s987_s18 = int_to_ptr.vmem [resolvable:$true] %s986_s18 }
 0x211   :  { %s1444_s19 = scalar_lea.vmem %s987_s18, 128  ;;  %p1449_p11 = scmp.lt.s32.totalorder %s987_s18, %s987_s18 }
 0x212   :  { %p1445_p10 = scmp.ne.s32.totalorder %s987_s18, %s1444_s19  ;;  %p1450_p12 = scmp.lt.s32.totalorder %s1444_s19, %s1444_s19 }
 0x213   :  { %1231 = vmatpush3.bf16.msra.mxu0 %v1348_v52 }
 0x214   :  { %1232 = vmatprep.subr.bf16.mxu0 %v1477_v0  ;;  %p1451_p13 = por %p1450_p12, %p1449_p11 }
 0x216   :  { %p1452_p0 = pnand %p1451_p13, %p1445_p10 }
 0x217   :  { %1233 = vmatpush3.bf16.msra.mxu0 %v1349_v53 }
 0x218   :  { %1234 = vmatprep.subr.bf16.mxu0 %v1477_v0 }
 0x21b   :  { %1235 = vmatpush3.bf16.msra.mxu0 %v1350_v54 }
 0x21c   :  { %1236 = vmatprep.subr.bf16.mxu0 %v1477_v0 }
 0x21f   :  { %1237 = vmatpush3.bf16.msra.mxu0 %v1351_v55 }
 0x220   :  { %1238 = vmatprep.subr.bf16.mxu0 %v1477_v0 }
 0x223   :  { %1239 = vmatpush3.bf16.msra.mxu0 %v1352_v1 }
 0x224   :  { %1240 = vmatprep.subr.bf16.mxu0 %v1477_v0 }
 0x227   :  { %1241 = vmatpush3.bf16.msra.mxu0 %v1353_v2 }
 0x228   :  { %1266 = vmatprep.subr.bf16.mxu0 %v1477_v0 }
 0x2dd   :  { %v395_v57 = vpop.f32.mrb[4].mxu0 }
 0x2de   :  { %v396_v58 = vadd.f32 %v1015_v56, %v395_v57  ;;  %v1204_v59 = vpop.f32.mrb[5].mxu0 }
 0x2df   :  { %v398_v60 = vpop.f32.mrb[6].mxu0  ;;  %v1065_v59 = vld [vmem:[%s1683_s4 + $0x3] ss:$0 sm:$0xff] }
 0x2e0   :  { %v401_v61 = vmax.f32 %v396_v58, 0.0  ;;  %v1205_v62 = vpop.f32.mrb[7].mxu0 }
 0x2e2   :  { %v402_v63 = vpack.c.bf16 %v401_v61, %v401_v61 }
 0x2e4   :  { %1223 = vmatmul.mubr.bf16.vlgmr.msra.gmra.mrb[4].mxu1 %v402_v63 }
 0x2e5   :  { %1262 = vmatprep.mubr.msk.bf16.mxu1 %vm1478_vm0, %v1477_v0  ;;  %1247 = vmatpush3.bf16.msra.mxu1 %v1354_v3 }
 0x2e6   :  { %1248 = vmatprep.subr.bf16.mxu1 %v1477_v0 }
 0x2e9   :  { %1249 = vmatpush3.bf16.msra.mxu1 %v1355_v4 }
 0x2ea   :  { %1250 = vmatprep.subr.bf16.mxu1 %v1477_v0 }
 0x2ed   :  { %1251 = vmatpush3.bf16.msra.mxu1 %v1356_v5 }
 0x2ee   :  { %1252 = vmatprep.subr.bf16.mxu1 %v1477_v0 }
 0x2f1   :  { %1253 = vmatpush3.bf16.msra.mxu1 %v1357_v6 }
 0x2f2   :  { %1254 = vmatprep.subr.bf16.mxu1 %v1477_v0 }
 0x2f5   :  { %1255 = vmatpush3.bf16.msra.mxu1 %v1358_v7 }
 0x2f6   :  { %1256 = vmatprep.subr.bf16.mxu1 %v1477_v0 }
 0x2f9   :  { %1257 = vmatpush3.bf16.msra.mxu1 %v1359_v8 }
 0x2fa   :  { %1258 = vmatprep.subr.bf16.mxu1 %v1477_v0 }
 0x2fd   :  { %1259 = vmatpush3.bf16.msra.mxu1 %v1360_v18 }
 0x2fe   :  { %1260 = vmatprep.subr.bf16.mxu1 %v1477_v0 }
 0x301   :  { %1261 = vmatpush3.bf16.msra.mxu1 %v1361_v19 }
 0x302   :  { %1286 = vmatprep.subr.bf16.mxu1 %v1477_v0 }
 0x3b7   :  { %v510_v10 = vpop.f32.mrb[4].mxu1 }
 0x3b8   :  { %v511_v11 = vadd.f32 %v1025_v9, %v510_v10  ;;  %v1224_v12 = vpop.f32.mrb[5].mxu1 }
 0x3b9   :  { %v513_v13 = vpop.f32.mrb[6].mxu1 }
 0x3ba   :  { %v1629_v15 = vadd.f32 %v511_v11, %v1567_v14  ;;  %v1225_v16 = vpop.f32.mrb[7].mxu1 }
 0x3bc   :  { %v517_v17 = vpack.c.bf16 %v1629_v15, %v1629_v15 }
 0x3be   :  { %1243 = vmatmul.mubr.bf16.vlgmr.msra.gmra.mrb[8].mxu0 %v517_v17 }
 0x3bf   :  { %1282 = vmatprep.mubr.msk.bf16.mxu0 %vm1478_vm0, %v1477_v0  ;;  %1267 = vmatpush3.bf16.msra.mxu0 %v1362_v20 }
 0x3c0   :  { %1268 = vmatprep.subr.bf16.mxu0 %v1477_v0 }
 0x3c3   :  { %1269 = vmatpush3.bf16.msra.mxu0 %v1363_v21 }
 0x3c4   :  { %1270 = vmatprep.subr.bf16.mxu0 %v1477_v0 }
 0x3c7   :  { %1271 = vmatpush3.bf16.msra.mxu0 %v1364_v22 }
 0x3c8   :  { %1272 = vmatprep.subr.bf16.mxu0 %v1477_v0 }
 0x3cb   :  { %1273 = vmatpush3.bf16.msra.mxu0 %v1365_v23 }
 0x3cc   :  { %1274 = vmatprep.subr.bf16.mxu0 %v1477_v0 }
 0x3cf   :  { %1275 = vmatpush3.bf16.msra.mxu0 %v1366_v24 }
 0x3d0   :  { %1276 = vmatprep.subr.bf16.mxu0 %v1477_v0 }
 0x3d3   :  { %1277 = vmatpush3.bf16.msra.mxu0 %v1367_v25 }
 0x3d4   :  { %1278 = vmatprep.subr.bf16.mxu0 %v1477_v0 }
 0x3d7   :  { %1279 = vmatpush3.bf16.msra.mxu0 %v1368_v26 }
 0x3d8   :  { %1280 = vmatprep.subr.bf16.mxu0 %v1477_v0 }
 0x3db   :  { %1281 = vmatpush3.bf16.msra.mxu0 %v1369_v35 }
 0x491   :  { %v625_v28 = vpop.f32.mrb[8].mxu0 }
 0x492   :  { %v626_v29 = vadd.f32 %v1035_v27, %v625_v28  ;;  %v1244_v30 = vpop.f32.mrb[9].mxu0 }
 0x493   :  { %v628_v31 = vpop.f32.mrb[10].mxu0 }
 0x494   :  { %v631_v32 = vmax.f32 %v626_v29, 0.0  ;;  %v1245_v33 = vpop.f32.mrb[11].mxu0 }
 0x496   :  { %v632_v34 = vpack.c.bf16 %v631_v32, %v631_v32 }
 0x498   :  { %1263 = vmatmul.mubr.bf16.vlgmr.msra.gmra.mrb[8].mxu1 %v632_v34 }
 0x499   :  { %1302 = vmatprep.mubr.msk.bf16.mxu1 %vm1478_vm0, %v1477_v0  ;;  %1287 = vmatpush3.bf16.msra.mxu1 %v1370_v36 }
 0x49a   :  { %1288 = vmatprep.subr.bf16.mxu1 %v1477_v0 }
 0x49d   :  { %1289 = vmatpush3.bf16.msra.mxu1 %v1371_v37 }
 0x49e   :  { %1290 = vmatprep.subr.bf16.mxu1 %v1477_v0 }
 0x4a1   :  { %1291 = vmatpush3.bf16.msra.mxu1 %v1372_v38 }
 0x4a2   :  { %1292 = vmatprep.subr.bf16.mxu1 %v1477_v0 }
 0x4a5   :  { %1293 = vmatpush3.bf16.msra.mxu1 %v1373_v39 }
 0x4a6   :  { %1294 = vmatprep.subr.bf16.mxu1 %v1477_v0 }
 0x4a9   :  { %1295 = vmatpush3.bf16.msra.mxu1 %v1374_v40 }
 0x4aa   :  { %1296 = vmatprep.subr.bf16.mxu1 %v1477_v0 }
 0x4ad   :  { %1297 = vmatpush3.bf16.msra.mxu1 %v1375_v41 }
 0x4ae   :  { %1298 = vmatprep.subr.bf16.mxu1 %v1477_v0 }
 0x4b1   :  { %1299 = vmatpush3.bf16.msra.mxu1 %v1376_v49 }
 0x4b2   :  { %1300 = vmatprep.subr.bf16.mxu1 %v1477_v0 }
 0x4b5   :  { %1301 = vmatpush3.bf16.msra.mxu1 %v1377_v50 }
 0x56b   :  { %v740_v43 = vpop.f32.mrb[8].mxu1 }
 0x56c   :  { %v741_v44 = vadd.f32 %v1045_v42, %v740_v43  ;;  %v1264_v45 = vpop.f32.mrb[9].mxu1 }
 0x56d   :  { %v743_v46 = vpop.f32.mrb[10].mxu1 }
 0x56e   :  { %v746_v47 = vpack.c.bf16 %v741_v44, %v741_v44  ;;  %v1265_v48 = vpop.f32.mrb[11].mxu1 }
 0x570   :  { %1283 = vmatmul.mubr.bf16.vlgmr.msra.gmra.mrb[12].mxu0 %v746_v47 }
 0x643   :  { %v854_v52 = vpop.f32.mrb[12].mxu0 }
 0x644   :  { %v855_v53 = vadd.f32 %v1055_v51, %v854_v52  ;;  %v1284_v54 = vpop.f32.mrb[13].mxu0 }
 0x645   :  { %v857_v55 = vpop.f32.mrb[14].mxu0 }
 0x646   :  { %v860_v56 = vmax.f32 %v855_v53, 0.0  ;;  %v1285_v57 = vpop.f32.mrb[15].mxu0 }
 0x648   :  { %v861_v58 = vpack.c.bf16 %v860_v56, %v860_v56 }
 0x64a   :  { %1303 = vmatmul.mubr.bf16.vlgmr.msra.gmra.mrb[12].mxu1 %v861_v58 }
 0x71d   :  { %v969_v60 = vpop.f32.mrb[12].mxu1 }
 0x71e   :  { %v970_v0 = vadd.f32 %v1065_v59, %v969_v60  ;;  %v1304_v61 = vpop.f32.mrb[13].mxu1 }
 0x71f   :  { %v972_v62 = vpop.f32.mrb[14].mxu1 }
 0x720   :  { %v975_v63 = vadd.f32 %v970_v0, %v1629_v15  ;;  %v1305_v1 = vpop.f32.mrb[15].mxu1 }
 0x722   :  { %v976_v2 = vmul.f32 %v975_v63, %v1567_v14 }
 0x724   :  { %vm977_vm1 = vcmp.eq.f32.partialorder %v976_v2, 0.0 }
 0x725   :  { %v978_v3 = vsel %vm977_vm1, -1e+20, %v976_v2 }
 0x726   :  { %979 = vst [vmem:[#allocation8] sm:$0xff] %v978_v3 }
 0x727   :  { %1455 = shalt.err (!%p1452_p0)
}
 0x728   :  { %s1456_s21 = scalar_lea.hbm %s1684_s5, 128 }
 0x729   :  { %p1457_p1 = scmp.ne.s32.totalorder %s1684_s5, %s1456_s21  ;;  %p1460_p2 = scmp.lt.u32.totalorder %s1456_s21, %s1684_s5 }
 0x72b   :  { %p1462_p3 = pnand %p1460_p2, %p1457_p1 }
 0x72d   :  { %1465 = shalt.err (!%p1462_p3)
}
 0x72e   :  { %989 = dma.vmem_to_hbm [thread:$0]  %s987_s18, 128, %s1684_s5, [#allocation4]  }
 0x72f   :  { %1470 = dma.done.wait [#allocation4], 128  }
 0x730   :  { %1471 = vsyncadd [#allocation4], 4294967168 }
 0x731   :  { %993 = vsyncpa [#allocation3], 1 }
 0x732   :  { %994 = vsyncpa [#allocation6], 1 }
 0x733   :  { %995 = vsyncpa [#allocation4], 1 }

// kernel: tpu_custom_call.1
= control target key start
LH: loop header
LB: loop body
LE: loop exit
PB: predicated region body
PF: predicated region fallthrough
CT: control target
= control target key end

     0   :  { %10 = vsyncpa [#allocation3], 0  ;;  %s1679_s0 = inlined_call_operand.hbm [shape: f32[8,128], index: 0, kind: input, shape index: {}]   ;;  %s1680_s1 = inlined_call_operand.hbm [shape: bf16[4,128,128], index: 1, kind: input, shape index: {}]   ;;  %s1681_s2 = inlined_call_operand.vmem [shape: f32[4,1,128], index: 2, kind: input, shape index: {}]   ;;  %s1682_s3 = inlined_call_operand.hbm [shape: bf16[4,128,128], index: 3, kind: input, shape index: {}]   ;;  %s1683_s4 = inlined_call_operand.vmem [shape: f32[4,1,128], index: 4, kind: input, shape index: {}]   ;;  %s1684_s5 = inlined_call_operand.hbm [shape: f32[8,128], index: 5, kind: output, shape index: {}]  }
   0x1   :  { %11 = vsyncpa [#allocation6], 0 }
   0x2   :  { %12 = vsyncpa [#allocation4], 0  ;;  %s1472_s18 = smov [#allocation5]   ;;  %s1378_s22 = scalar_lea.hbm %s1680_s1, 4096 }
   0x3   :  { %s28_s19 = sshll.u32 %s1472_s18, 4  ;;  %p1379_p0 = scmp.ne.s32.totalorder %s1680_s1, %s1378_s22  ;;  %s29_s19 = int_to_ptr.vmem [resolvable:$true] %s28_s19 }
   0x4   :  { %p1382_p1 = scmp.lt.u32.totalorder %s1378_s22, %s1680_s1 }
   0x6   :  { %p1384_p2 = pnand %p1382_p1, %p1379_p0 }
   0x8   :  { %1387 = shalt.err (!%p1384_p2)
}
   0x9   :  { %s1388_s27 = scalar_lea.vmem %s29_s19, 4096  ;;  %p1393_p4 = scmp.lt.s32.totalorder %s29_s19, %s29_s19 }
   0xa   :  { %p1389_p3 = scmp.ne.s32.totalorder %s29_s19, %s1388_s27  ;;  %p1394_p5 = scmp.lt.s32.totalorder %s1388_s27, %s1388_s27 }
   0xc   :  { %p1395_p6 = por %p1394_p5, %p1393_p4 }
   0xe   :  { %p1396_p7 = pnand %p1395_p6, %p1389_p3 }
  0x10   :  { %1399 = shalt.err (!%p1396_p7)
}
  0x11   :  { %s1473_s28 = smov 64   ;;  %s1474_s29 = smov 4  }
  0x12   :  { %34 = dma.hbm_to_vmem [thread:$0]  %s1680_s1, 4096, %s29_s19, [#allocation6], %s1473_s28, %s1473_s28, %s1474_s29  }
  0x13   :  { %s1475_s7 = smov [#allocation2]   ;;  %s1476_s9 = smov [#allocation7]  }
  0x14   :  { %s19_s8 = sshll.u32 %s1475_s7, 4  ;;  %s42_s10 = sshll.u32 %s1476_s9, 4  ;;  %s20_s8 = int_to_ptr.vmem [resolvable:$true] %s19_s8  ;;  %s43_s10 = int_to_ptr.vmem [resolvable:$true] %s42_s10 }
  0x15   :  { %s1400_s13 = scalar_lea.hbm %s1679_s0, 128 }
  0x16   :  { %p1401_p8 = scmp.ne.s32.totalorder %s1679_s0, %s1400_s13  ;;  %p1404_p9 = scmp.lt.u32.totalorder %s1400_s13, %s1679_s0 }
  0x18   :  { %p1406_p10 = pnand %p1404_p9, %p1401_p8 }
  0x1a   :  { %1409 = shalt.err (!%p1406_p10)
}
  0x1b   :  { %s1410_s1 = scalar_lea.vmem %s20_s8, 128  ;;  %p1415_p12 = scmp.lt.s32.totalorder %s20_s8, %s20_s8 }
  0x1c   :  { %p1411_p11 = scmp.ne.s32.totalorder %s20_s8, %s1410_s1  ;;  %p1416_p13 = scmp.lt.s32.totalorder %s1410_s1, %s1410_s1 }
  0x1e   :  { %p1417_p0 = por %p1416_p13, %p1415_p12 }
  0x20   :  { %p1418_p1 = pnand %p1417_p0, %p1411_p11 }
  0x22   :  { %1421 = shalt.err (!%p1418_p1)
}
  0x23   :  { %22 = dma.hbm_to_vmem [thread:$0]  %s1679_s0, 128, %s20_s8, [#allocation3]  }
  0x24   :  { %s1422_s22 = scalar_lea.hbm %s1682_s3, 4096 }
  0x25   :  { %p1423_p2 = scmp.ne.s32.totalorder %s1682_s3, %s1422_s22  ;;  %p1426_p3 = scmp.lt.u32.totalorder %s1422_s22, %s1682_s3 }
  0x27   :  { %p1428_p4 = pnand %p1426_p3, %p1423_p2 }
  0x29   :  { %1431 = shalt.err (!%p1428_p4)
}
  0x2a   :  { %s1432_s27 = scalar_lea.vmem %s43_s10, 4096  ;;  %p1437_p6 = scmp.lt.s32.totalorder %s43_s10, %s43_s10 }
  0x2b   :  { %p1433_p5 = scmp.ne.s32.totalorder %s43_s10, %s1432_s27  ;;  %p1438_p7 = scmp.lt.s32.totalorder %s1432_s27, %s1432_s27 }
  0x2d   :  { %p1439_p8 = por %p1438_p7, %p1437_p6 }
  0x2f   :  { %p1440_p9 = pnand %p1439_p8, %p1433_p5 }
  0x31   :  { %1443 = shalt.err (!%p1440_p9)
}
  0x32   :  { %48 = dma.hbm_to_vmem [thread:$0]  %s1682_s3, 4096, %s43_s10, [#allocation6], %s1473_s28, %s1473_s28, %s1474_s29  }
  0x33   :  { %1466 = dma.done.wait [#allocation3], 128  }
  0x34   :  { %1467 = vsyncadd [#allocation3], 4294967168 }
  0x35   :  { %1468 = dma.done.wait [#allocation6], 8192  }
  0x36   :  { %1469 = vsyncadd [#allocation6], 4294959104  ;;  %v1477_v0 = vmov 0.0   ;;  %vm1478_vm0 = vmmov 0   ;;  %v1314_v1 = vld [vmem:[#allocation5] sm:$0xff]   ;;  %v1315_v2 = vld [vmem:[#allocation5 + $0x8] sm:$0xff]  }
  0x37   :  { %1146 = vmatprep.subr.bf16.mxu0 %v1477_v0  ;;  %1162 = vmatprep.mubr.msk.bf16.mxu0 %vm1478_vm0, %v1477_v0  ;;  %v1316_v3 = vld [vmem:[#allocation5 + $0x10] sm:$0xff]   ;;  %v1322_v4 = vld [vmem:[#allocation7] sm:$0xff]   ;;  %v1317_v5 = vld [vmem:[#allocation5 + $0x18] sm:$0xff]  }
  0x38   :  { %1166 = vmatprep.subr.bf16.mxu1 %v1477_v0  ;;  %1182 = vmatprep.mubr.msk.bf16.mxu1 %vm1478_vm0, %v1477_v0  ;;  %v1323_v6 = vld [vmem:[#allocation7 + $0x8] sm:$0xff]   ;;  %v1318_v7 = vld [vmem:[#allocation5 + $0x20] sm:$0xff]   ;;  %v1324_v8 = vld [vmem:[#allocation7 + $0x10] sm:$0xff]  }
  0x39   :  { %1147 = vmatpush3.bf16.msra.mxu0 %v1314_v1  ;;  %1167 = vmatpush3.bf16.msra.mxu1 %v1322_v4  ;;  %v1319_v9 = vld [vmem:[#allocation5 + $0x28] sm:$0xff]   ;;  %v1325_v10 = vld [vmem:[#allocation7 + $0x18] sm:$0xff]   ;;  %v1320_v11 = vld [vmem:[#allocation5 + $0x30] sm:$0xff]  }
  0x3a   :  { %1148 = vmatprep.subr.bf16.mxu0 %v1477_v0  ;;  %1168 = vmatprep.subr.bf16.mxu1 %v1477_v0  ;;  %v1326_v12 = vld [vmem:[#allocation7 + $0x20] sm:$0xff]   ;;  %v1321_v13 = vld [vmem:[#allocation5 + $0x38] sm:$0xff]   ;;  %v1327_v15 = vld [vmem:[#allocation7 + $0x28] sm:$0xff]  }
  0x3b   :  { %v1567_v14 = vld [vmem:[#allocation2] sm:$0xff]  ;;  %v1328_v17 = vld [vmem:[#allocation7 + $0x30] sm:$0xff]   ;;  %v1330_v19 = vld [vmem:[#allocation5 + $0x40] sm:$0xff]  }
  0x3c   :  { %v62_v16 = vpack.c.bf16 %v1567_v14, %v1567_v14  ;;  %v1329_v18 = vld [vmem:[#allocation7 + $0x38] sm:$0xff]   ;;  %v1331_v20 = vld [vmem:[#allocation5 + $0x48] sm:$0xff]   ;;  %v1332_v21 = vld [vmem:[#allocation5 + $0x50] sm:$0xff]  }
  0x3d   :  { %1149 = vmatpush3.bf16.msra.mxu0 %v1315_v2  ;;  %1169 = vmatpush3.bf16.msra.mxu1 %v1323_v6  ;;  %v1333_v22 = vld [vmem:[#allocation5 + $0x58] sm:$0xff]   ;;  %v1334_v23 = vld [vmem:[#allocation5 + $0x60] sm:$0xff]   ;;  %v1335_v24 = vld [vmem:[#allocation5 + $0x68] sm:$0xff]  }
  0x3e   :  { %1150 = vmatprep.subr.bf16.mxu0 %v1477_v0  ;;  %1170 = vmatprep.subr.bf16.mxu1 %v1477_v0  ;;  %v1336_v25 = vld [vmem:[#allocation5 + $0x70] sm:$0xff]   ;;  %v996_v26 = vld [vmem:[%s1681_s2] ss:$0 sm:$0xff]  ;;  %v1338_v35 = vld [vmem:[#allocation7 + $0x40] sm:$0xff]  }
  0x3f   :  { %v1337_v34 = vld [vmem:[#allocation5 + $0x78] sm:$0xff]   ;;  %v1339_v36 = vld [vmem:[#allocation7 + $0x48] sm:$0xff]   ;;  %v1340_v37 = vld [vmem:[#allocation7 + $0x50] sm:$0xff]  }
  0x40   :  { %v1341_v38 = vld [vmem:[#allocation7 + $0x58] sm:$0xff]   ;;  %v1342_v39 = vld [vmem:[#allocation7 + $0x60] sm:$0xff]   ;;  %v1343_v40 = vld [vmem:[#allocation7 + $0x68] sm:$0xff]  }
  0x41   :  { %1151 = vmatpush3.bf16.msra.mxu0 %v1316_v3  ;;  %1171 = vmatpush3.bf16.msra.mxu1 %v1324_v8  ;;  %v1005_v41 = vld [vmem:[%s1683_s4] ss:$0 sm:$0xff]  ;;  %v1344_v48 = vld [vmem:[#allocation7 + $0x70] sm:$0xff]   ;;  %v1346_v50 = vld [vmem:[#allocation5 + $0x80] sm:$0xff]  }
  0x42   :  { %1152 = vmatprep.subr.bf16.mxu0 %v1477_v0  ;;  %1172 = vmatprep.subr.bf16.mxu1 %v1477_v0  ;;  %v1345_v49 = vld [vmem:[#allocation7 + $0x78] sm:$0xff]   ;;  %v1347_v51 = vld [vmem:[#allocation5 + $0x88] sm:$0xff]   ;;  %v1348_v52 = vld [vmem:[#allocation5 + $0x90] sm:$0xff]  }
  0x43   :  { %v1349_v53 = vld [vmem:[#allocation5 + $0x98] sm:$0xff]   ;;  %v1350_v54 = vld [vmem:[#allocation5 + $0xa0] sm:$0xff]   ;;  %v1351_v55 = vld [vmem:[#allocation5 + $0xa8] sm:$0xff]  }
  0x44   :  { %v1015_v56 = vld [vmem:[%s1681_s2 + $0x1] ss:$0 sm:$0xff]  ;;  %v1352_v1 = vld [vmem:[#allocation5 + $0xb0] sm:$0xff]   ;;  %v1354_v3 = vld [vmem:[#allocation7 + $0x80] sm:$0xff]  }
  0x45   :  { %1153 = vmatpush3.bf16.msra.mxu0 %v1317_v5  ;;  %1173 = vmatpush3.bf16.msra.mxu1 %v1325_v10  ;;  %v1353_v2 = vld [vmem:[#allocation5 + $0xb8] sm:$0xff]   ;;  %v1355_v4 = vld [vmem:[#allocation7 + $0x88] sm:$0xff]   ;;  %v1356_v5 = vld [vmem:[#allocation7 + $0x90] sm:$0xff]  }
  0x46   :  { %1154 = vmatprep.subr.bf16.mxu0 %v1477_v0  ;;  %1174 = vmatprep.subr.bf16.mxu1 %v1477_v0  ;;  %v1357_v6 = vld [vmem:[#allocation7 + $0x98] sm:$0xff]   ;;  %v1359_v8 = vld [vmem:[#allocation7 + $0xa8] sm:$0xff]  }
  0x49   :  { %1155 = vmatpush3.bf16.msra.mxu0 %v1318_v7  ;;  %1175 = vmatpush3.bf16.msra.mxu1 %v1326_v12  ;;  %v1358_v7 = vld [vmem:[#allocation7 + $0xa0] sm:$0xff]  }
  0x4a   :  { %1156 = vmatprep.subr.bf16.mxu0 %v1477_v0  ;;  %1176 = vmatprep.subr.bf16.mxu1 %v1477_v0 }
  0x4d   :  { %1157 = vmatpush3.bf16.msra.mxu0 %v1319_v9  ;;  %1177 = vmatpush3.bf16.msra.mxu1 %v1327_v15  ;;  %v1025_v9 = vld [vmem:[%s1683_s4 + $0x1] ss:$0 sm:$0xff] }
  0x4e   :  { %1158 = vmatprep.subr.bf16.mxu0 %v1477_v0  ;;  %1178 = vmatprep.subr.bf16.mxu1 %v1477_v0 }
  0x51   :  { %1159 = vmatpush3.bf16.msra.mxu0 %v1320_v11  ;;  %1179 = vmatpush3.bf16.msra.mxu1 %v1328_v17 }
  0x52   :  { %1160 = vmatprep.subr.bf16.mxu0 %v1477_v0  ;;  %1180 = vmatprep.subr.bf16.mxu1 %v1477_v0 }
  0x55   :  { %1161 = vmatpush3.bf16.msra.mxu0 %v1321_v13  ;;  %1181 = vmatpush3.bf16.msra.mxu1 %v1329_v18  ;;  %v1360_v18 = vld [vmem:[#allocation7 + $0xb0] sm:$0xff]  }
  0x56   :  { %1186 = vmatprep.subr.bf16.mxu0 %v1477_v0  ;;  %1206 = vmatprep.subr.bf16.mxu1 %v1477_v0 }
  0x58   :  { %1163 = vmatmul.mubr.bf16.vlgmr.msra.gmra.mrb[0].mxu0 %v62_v16 }
  0x59   :  { %1202 = vmatprep.mubr.msk.bf16.mxu0 %vm1478_vm0, %v1477_v0  ;;  %1187 = vmatpush3.bf16.msra.mxu0 %v1330_v19  ;;  %v1361_v19 = vld [vmem:[#allocation7 + $0xb8] sm:$0xff]  }
  0x5a   :  { %1188 = vmatprep.subr.bf16.mxu0 %v1477_v0 }
  0x5d   :  { %1189 = vmatpush3.bf16.msra.mxu0 %v1331_v20  ;;  %v1362_v20 = vld [vmem:[#allocation5 + $0xc0] sm:$0xff]  }
  0x5e   :  { %1190 = vmatprep.subr.bf16.mxu0 %v1477_v0 }
  0x61   :  { %1191 = vmatpush3.bf16.msra.mxu0 %v1332_v21  ;;  %v1363_v21 = vld [vmem:[#allocation5 + $0xc8] sm:$0xff]  }
  0x62   :  { %1192 = vmatprep.subr.bf16.mxu0 %v1477_v0 }
  0x65   :  { %1193 = vmatpush3.bf16.msra.mxu0 %v1333_v22  ;;  %v1364_v22 = vld [vmem:[#allocation5 + $0xd0] sm:$0xff]  }
  0x66   :  { %1194 = vmatprep.subr.bf16.mxu0 %v1477_v0 }
  0x69   :  { %1195 = vmatpush3.bf16.msra.mxu0 %v1334_v23  ;;  %v1365_v23 = vld [vmem:[#allocation5 + $0xd8] sm:$0xff]  }
  0x6a   :  { %1196 = vmatprep.subr.bf16.mxu0 %v1477_v0 }
  0x6d   :  { %1197 = vmatpush3.bf16.msra.mxu0 %v1335_v24  ;;  %v1366_v24 = vld [vmem:[#allocation5 + $0xe0] sm:$0xff]  }
  0x6e   :  { %1198 = vmatprep.subr.bf16.mxu0 %v1477_v0 }
  0x71   :  { %1199 = vmatpush3.bf16.msra.mxu0 %v1336_v25  ;;  %v1367_v25 = vld [vmem:[#allocation5 + $0xe8] sm:$0xff]  }
  0x72   :  { %1200 = vmatprep.subr.bf16.mxu0 %v1477_v0 }
  0x75   :  { %1201 = vmatpush3.bf16.msra.mxu0 %v1337_v34 }
  0x76   :  { %1226 = vmatprep.subr.bf16.mxu0 %v1477_v0 }
 0x12b   :  { %v168_v27 = vpop.f32.mrb[0].mxu0 }
 0x12c   :  { %v169_v28 = vadd.f32 %v996_v26, %v168_v27  ;;  %v1164_v29 = vpop.f32.mrb[1].mxu0  ;;  %v1368_v26 = vld [vmem:[#allocation5 + $0xf0] sm:$0xff]   ;;  %v1035_v27 = vld [vmem:[%s1681_s2 + $0x2] ss:$0 sm:$0xff] }
 0x12d   :  { %v171_v30 = vpop.f32.mrb[2].mxu0 }
 0x12e   :  { %v174_v31 = vmax.f32 %v169_v28, 0.0  ;;  %v1165_v32 = vpop.f32.mrb[3].mxu0 }
 0x130   :  { %v175_v33 = vpack.c.bf16 %v174_v31, %v174_v31 }
 0x132   :  { %1183 = vmatmul.mubr.bf16.vlgmr.msra.gmra.mrb[0].mxu1 %v175_v33 }
 0x133   :  { %1222 = vmatprep.mubr.msk.bf16.mxu1 %vm1478_vm0, %v1477_v0  ;;  %1207 = vmatpush3.bf16.msra.mxu1 %v1338_v35  ;;  %v1369_v35 = vld [vmem:[#allocation5 + $0xf8] sm:$0xff]  }
 0x134   :  { %1208 = vmatprep.subr.bf16.mxu1 %v1477_v0 }
 0x137   :  { %1209 = vmatpush3.bf16.msra.mxu1 %v1339_v36  ;;  %v1370_v36 = vld [vmem:[#allocation7 + $0xc0] sm:$0xff]  }
 0x138   :  { %1210 = vmatprep.subr.bf16.mxu1 %v1477_v0 }
 0x13b   :  { %1211 = vmatpush3.bf16.msra.mxu1 %v1340_v37  ;;  %v1371_v37 = vld [vmem:[#allocation7 + $0xc8] sm:$0xff]  }
 0x13c   :  { %1212 = vmatprep.subr.bf16.mxu1 %v1477_v0 }
 0x13f   :  { %1213 = vmatpush3.bf16.msra.mxu1 %v1341_v38  ;;  %v1372_v38 = vld [vmem:[#allocation7 + $0xd0] sm:$0xff]  }
 0x140   :  { %1214 = vmatprep.subr.bf16.mxu1 %v1477_v0 }
 0x143   :  { %1215 = vmatpush3.bf16.msra.mxu1 %v1342_v39  ;;  %v1373_v39 = vld [vmem:[#allocation7 + $0xd8] sm:$0xff]  }
 0x144   :  { %1216 = vmatprep.subr.bf16.mxu1 %v1477_v0 }
 0x147   :  { %1217 = vmatpush3.bf16.msra.mxu1 %v1343_v40  ;;  %v1374_v40 = vld [vmem:[#allocation7 + $0xe0] sm:$0xff]  }
 0x148   :  { %1218 = vmatprep.subr.bf16.mxu1 %v1477_v0 }
 0x14b   :  { %1219 = vmatpush3.bf16.msra.mxu1 %v1344_v48 }
 0x14c   :  { %1220 = vmatprep.subr.bf16.mxu1 %v1477_v0 }
 0x14f   :  { %1221 = vmatpush3.bf16.msra.mxu1 %v1345_v49  ;;  %v1376_v49 = vld [vmem:[#allocation7 + $0xf0] sm:$0xff]  }
 0x150   :  { %1246 = vmatprep.subr.bf16.mxu1 %v1477_v0 }
 0x205   :  { %v281_v42 = vpop.f32.mrb[0].mxu1 }
 0x206   :  { %v282_v43 = vadd.f32 %v1005_v41, %v281_v42  ;;  %v1184_v44 = vpop.f32.mrb[1].mxu1  ;;  %v1375_v41 = vld [vmem:[#allocation7 + $0xe8] sm:$0xff]   ;;  %v1045_v42 = vld [vmem:[%s1683_s4 + $0x2] ss:$0 sm:$0xff] }
 0x207   :  { %v284_v45 = vpop.f32.mrb[2].mxu1 }
 0x208   :  { %v287_v46 = vpack.c.bf16 %v282_v43, %v282_v43  ;;  %v1185_v47 = vpop.f32.mrb[3].mxu1 }
 0x20a   :  { %1203 = vmatmul.mubr.bf16.vlgmr.msra.gmra.mrb[4].mxu0 %v287_v46 }
 0x20b   :  { %1242 = vmatprep.mubr.msk.bf16.mxu0 %vm1478_vm0, %v1477_v0  ;;  %1227 = vmatpush3.bf16.msra.mxu0 %v1346_v50  ;;  %v1377_v50 = vld [vmem:[#allocation7 + $0xf8] sm:$0xff]  }
 0x20c   :  { %1228 = vmatprep.subr.bf16.mxu0 %v1477_v0 }
 0x20f   :  { %1229 = vmatpush3.bf16.msra.mxu0 %v1347_v51  ;;  %v1055_v51 = vld [vmem:[%s1681_s2 + $0x3] ss:$0 sm:$0xff]  ;;  %s1479_s2 = smov [#allocation8]  }
 0x210   :  { %1230 = vmatprep.subr.bf16.mxu0 %v1477_v0  ;;  %s986_s18 = sshll.u32 %s1479_s2, 4  ;;  %s987_s18 = int_to_ptr.vmem [resolvable:$true] %s986_s18 }
 0x211   :  { %s1444_s19 = scalar_lea.vmem %s987_s18, 128  ;;  %p1449_p11 = scmp.lt.s32.totalorder %s987_s18, %s987_s18 }
 0x212   :  { %p1445_p10 = scmp.ne.s32.totalorder %s987_s18, %s1444_s19  ;;  %p1450_p12 = scmp.lt.s32.totalorder %s1444_s19, %s1444_s19 }
 0x213   :  { %1231 = vmatpush3.bf16.msra.mxu0 %v1348_v52 }
 0x214   :  { %1232 = vmatprep.subr.bf16.mxu0 %v1477_v0  ;;  %p1451_p13 = por %p1450_p12, %p1449_p11 }
 0x216   :  { %p1452_p0 = pnand %p1451_p13, %p1445_p10 }
 0x217   :  { %1233 = vmatpush3.bf16.msra.mxu0 %v1349_v53 }
 0x218   :  { %1234 = vmatprep.subr.bf16.mxu0 %v1477_v0 }
 0x21b   :  { %1235 = vmatpush3.bf16.msra.mxu0 %v1350_v54 }
 0x21c   :  { %1236 = vmatprep.subr.bf16.mxu0 %v1477_v0 }
 0x21f   :  { %1237 = vmatpush3.bf16.msra.mxu0 %v1351_v55 }
 0x220   :  { %1238 = vmatprep.subr.bf16.mxu0 %v1477_v0 }
 0x223   :  { %1239 = vmatpush3.bf16.msra.mxu0 %v1352_v1 }
 0x224   :  { %1240 = vmatprep.subr.bf16.mxu0 %v1477_v0 }
 0x227   :  { %1241 = vmatpush3.bf16.msra.mxu0 %v1353_v2 }
 0x228   :  { %1266 = vmatprep.subr.bf16.mxu0 %v1477_v0 }
 0x2dd   :  { %v395_v57 = vpop.f32.mrb[4].mxu0 }
 0x2de   :  { %v396_v58 = vadd.f32 %v1015_v56, %v395_v57  ;;  %v1204_v59 = vpop.f32.mrb[5].mxu0 }
 0x2df   :  { %v398_v60 = vpop.f32.mrb[6].mxu0  ;;  %v1065_v59 = vld [vmem:[%s1683_s4 + $0x3] ss:$0 sm:$0xff] }
 0x2e0   :  { %v401_v61 = vmax.f32 %v396_v58, 0.0  ;;  %v1205_v62 = vpop.f32.mrb[7].mxu0 }
 0x2e2   :  { %v402_v63 = vpack.c.bf16 %v401_v61, %v401_v61 }
 0x2e4   :  { %1223 = vmatmul.mubr.bf16.vlgmr.msra.gmra.mrb[4].mxu1 %v402_v63 }
 0x2e5   :  { %1262 = vmatprep.mubr.msk.bf16.mxu1 %vm1478_vm0, %v1477_v0  ;;  %1247 = vmatpush3.bf16.msra.mxu1 %v1354_v3 }
 0x2e6   :  { %1248 = vmatprep.subr.bf16.mxu1 %v1477_v0 }
 0x2e9   :  { %1249 = vmatpush3.bf16.msra.mxu1 %v1355_v4 }
 0x2ea   :  { %1250 = vmatprep.subr.bf16.mxu1 %v1477_v0 }
 0x2ed   :  { %1251 = vmatpush3.bf16.msra.mxu1 %v1356_v5 }
 0x2ee   :  { %1252 = vmatprep.subr.bf16.mxu1 %v1477_v0 }
 0x2f1   :  { %1253 = vmatpush3.bf16.msra.mxu1 %v1357_v6 }
 0x2f2   :  { %1254 = vmatprep.subr.bf16.mxu1 %v1477_v0 }
 0x2f5   :  { %1255 = vmatpush3.bf16.msra.mxu1 %v1358_v7 }
 0x2f6   :  { %1256 = vmatprep.subr.bf16.mxu1 %v1477_v0 }
 0x2f9   :  { %1257 = vmatpush3.bf16.msra.mxu1 %v1359_v8 }
 0x2fa   :  { %1258 = vmatprep.subr.bf16.mxu1 %v1477_v0 }
 0x2fd   :  { %1259 = vmatpush3.bf16.msra.mxu1 %v1360_v18 }
 0x2fe   :  { %1260 = vmatprep.subr.bf16.mxu1 %v1477_v0 }
 0x301   :  { %1261 = vmatpush3.bf16.msra.mxu1 %v1361_v19 }
 0x302   :  { %1286 = vmatprep.subr.bf16.mxu1 %v1477_v0 }
 0x3b7   :  { %v510_v10 = vpop.f32.mrb[4].mxu1 }
 0x3b8   :  { %v511_v11 = vadd.f32 %v1025_v9, %v510_v10  ;;  %v1224_v12 = vpop.f32.mrb[5].mxu1 }
 0x3b9   :  { %v513_v13 = vpop.f32.mrb[6].mxu1 }
 0x3ba   :  { %v1629_v15 = vadd.f32 %v511_v11, %v1567_v14  ;;  %v1225_v16 = vpop.f32.mrb[7].mxu1 }
 0x3bc   :  { %v517_v17 = vpack.c.bf16 %v1629_v15, %v1629_v15 }
 0x3be   :  { %1243 = vmatmul.mubr.bf16.vlgmr.msra.gmra.mrb[8].mxu0 %v517_v17 }
 0x3bf   :  { %1282 = vmatprep.mubr.msk.bf16.mxu0 %vm1478_vm0, %v1477_v0  ;;  %1267 = vmatpush3.bf16.msra.mxu0 %v1362_v20 }
 0x3c0   :  { %1268 = vmatprep.subr.bf16.mxu0 %v1477_v0 }
 0x3c3   :  { %1269 = vmatpush3.bf16.msra.mxu0 %v1363_v21 }
 0x3c4   :  { %1270 = vmatprep.subr.bf16.mxu0 %v1477_v0 }
 0x3c7   :  { %1271 = vmatpush3.bf16.msra.mxu0 %v1364_v22 }
 0x3c8   :  { %1272 = vmatprep.subr.bf16.mxu0 %v1477_v0 }
 0x3cb   :  { %1273 = vmatpush3.bf16.msra.mxu0 %v1365_v23 }
 0x3cc   :  { %1274 = vmatprep.subr.bf16.mxu0 %v1477_v0 }
 0x3cf   :  { %1275 = vmatpush3.bf16.msra.mxu0 %v1366_v24 }
 0x3d0   :  { %1276 = vmatprep.subr.bf16.mxu0 %v1477_v0 }
 0x3d3   :  { %1277 = vmatpush3.bf16.msra.mxu0 %v1367_v25 }
 0x3d4   :  { %1278 = vmatprep.subr.bf16.mxu0 %v1477_v0 }
 0x3d7   :  { %1279 = vmatpush3.bf16.msra.mxu0 %v1368_v26 }
 0x3d8   :  { %1280 = vmatprep.subr.bf16.mxu0 %v1477_v0 }
 0x3db   :  { %1281 = vmatpush3.bf16.msra.mxu0 %v1369_v35 }
 0x491   :  { %v625_v28 = vpop.f32.mrb[8].mxu0 }
 0x492   :  { %v626_v29 = vadd.f32 %v1035_v27, %v625_v28  ;;  %v1244_v30 = vpop.f32.mrb[9].mxu0 }
 0x493   :  { %v628_v31 = vpop.f32.mrb[10].mxu0 }
 0x494   :  { %v631_v32 = vmax.f32 %v626_v29, 0.0  ;;  %v1245_v33 = vpop.f32.mrb[11].mxu0 }
 0x496   :  { %v632_v34 = vpack.c.bf16 %v631_v32, %v631_v32 }
 0x498   :  { %1263 = vmatmul.mubr.bf16.vlgmr.msra.gmra.mrb[8].mxu1 %v632_v34 }
 0x499   :  { %1302 = vmatprep.mubr.msk.bf16.mxu1 %vm1478_vm0, %v1477_v0  ;;  %1287 = vmatpush3.bf16.msra.mxu1 %v1370_v36 }
 0x49a   :  { %1288 = vmatprep.subr.bf16.mxu1 %v1477_v0 }
 0x49d   :  { %1289 = vmatpush3.bf16.msra.mxu1 %v1371_v37 }
 0x49e   :  { %1290 = vmatprep.subr.bf16.mxu1 %v1477_v0 }
 0x4a1   :  { %1291 = vmatpush3.bf16.msra.mxu1 %v1372_v38 }
 0x4a2   :  { %1292 = vmatprep.subr.bf16.mxu1 %v1477_v0 }
 0x4a5   :  { %1293 = vmatpush3.bf16.msra.mxu1 %v1373_v39 }
 0x4a6   :  { %1294 = vmatprep.subr.bf16.mxu1 %v1477_v0 }
 0x4a9   :  { %1295 = vmatpush3.bf16.msra.mxu1 %v1374_v40 }
 0x4aa   :  { %1296 = vmatprep.subr.bf16.mxu1 %v1477_v0 }
 0x4ad   :  { %1297 = vmatpush3.bf16.msra.mxu1 %v1375_v41 }
 0x4ae   :  { %1298 = vmatprep.subr.bf16.mxu1 %v1477_v0 }
 0x4b1   :  { %1299 = vmatpush3.bf16.msra.mxu1 %v1376_v49 }
 0x4b2   :  { %1300 = vmatprep.subr.bf16.mxu1 %v1477_v0 }
 0x4b5   :  { %1301 = vmatpush3.bf16.msra.mxu1 %v1377_v50 }
 0x56b   :  { %v740_v43 = vpop.f32.mrb[8].mxu1 }
 0x56c   :  { %v741_v44 = vadd.f32 %v1045_v42, %v740_v43  ;;  %v1264_v45 = vpop.f32.mrb[9].mxu1 }
 0x56d   :  { %v743_v46 = vpop.f32.mrb[10].mxu1 }
 0x56e   :  { %v746_v47 = vpack.c.bf16 %v741_v44, %v741_v44  ;;  %v1265_v48 = vpop.f32.mrb[11].mxu1 }
 0x570   :  { %1283 = vmatmul.mubr.bf16.vlgmr.msra.gmra.mrb[12].mxu0 %v746_v47 }
 0x643   :  { %v854_v52 = vpop.f32.mrb[12].mxu0 }
 0x644   :  { %v855_v53 = vadd.f32 %v1055_v51, %v854_v52  ;;  %v1284_v54 = vpop.f32.mrb[13].mxu0 }
 0x645   :  { %v857_v55 = vpop.f32.mrb[14].mxu0 }
 0x646   :  { %v860_v56 = vmax.f32 %v855_v53, 0.0  ;;  %v1285_v57 = vpop.f32.mrb[15].mxu0 }
 0x648   :  { %v861_v58 = vpack.c.bf16 %v860_v56, %v860_v56 }
 0x64a   :  { %1303 = vmatmul.mubr.bf16.vlgmr.msra.gmra.mrb[12].mxu1 %v861_v58 }
 0x71d   :  { %v969_v60 = vpop.f32.mrb[12].mxu1 }
 0x71e   :  { %v970_v0 = vadd.f32 %v1065_v59, %v969_v60  ;;  %v1304_v61 = vpop.f32.mrb[13].mxu1 }
 0x71f   :  { %v972_v62 = vpop.f32.mrb[14].mxu1 }
 0x720   :  { %v975_v63 = vadd.f32 %v970_v0, %v1629_v15  ;;  %v1305_v1 = vpop.f32.mrb[15].mxu1 }
 0x722   :  { %v976_v2 = vmul.f32 %v975_v63, %v1567_v14 }
 0x724   :  { %vm977_vm1 = vcmp.eq.f32.partialorder %v976_v2, 0.0 }
 0x725   :  { %v978_v3 = vsel %vm977_vm1, -1e+20, %v976_v2 }
 0x726   :  { %979 = vst [vmem:[#allocation8] sm:$0xff] %v978_v3 }
 0x727   :  { %1455 = shalt.err (!%p1452_p0)
}
 0x728   :  { %s1456_s21 = scalar_lea.hbm %s1684_s5, 128 }
 0x729   :  { %p1457_p1 = scmp.ne.s32.totalorder %s1684_s5, %s1456_s21  ;;  %p1460_p2 = scmp.lt.u32.totalorder %s1456_s21, %s1684_s5 }
 0x72b   :  { %p1462_p3 = pnand %p1460_p2, %p1457_p1 }
 0x72d   :  { %1465 = shalt.err (!%p1462_p3)
}
 0x72e   :  { %989 = dma.vmem_to_hbm [thread:$0]  %s987_s18, 128, %s1684_s5, [#allocation4]  }
 0x72f   :  { %1470 = dma.done.wait [#allocation4], 128  }
 0x730   :  { %1471 = vsyncadd [#allocation4], 4294967168 }
 0x731   :  { %993 = vsyncpa [#allocation3], 1 }
 0x732   :  { %994 = vsyncpa [#allocation6], 1 }
 0x733   :  { %995 = vsyncpa [#allocation4], 1 }

</bundles_post_ra>
